<compile_context>
chip_gen: v7x
topology: tpu7x:2x2x1
jax: 0.10.0
libtpu: 0.0.40
codegen_flags: <defaults>
</compile_context>

<pallas_src>
import functools
import math

import jax
import jax.numpy as jnp
import numpy as np
from jax.experimental import pallas as pl
from jax.experimental.pallas import tpu as pltpu


def _round_up(x, m):
    return ((x + m - 1) // m) * m


def mha_kernel(x_ref, wqkv_ref, bqkv_ref, wo_ref, bo_ref, o_ref, *, num_heads, batch):
    # x_ref : (TS*B, Cin_pad) -- TS spatial positions ("attention batches"),
    #                            each attending over the B batch entries.
    # wqkv  : (Cin_pad, 3C) fused QKV weight, 1/sqrt(hd) folded into the Q cols.
    # wo    : (C, Cout_pad) full-width output projection.
    M = x_ref.shape[0]
    B = batch
    TS = M // B
    C = wqkv_ref.shape[1] // 3
    nh = num_heads
    hd = C // nh
    mm_dtype = x_ref.dtype            # bf16 if requested by the wrapper, else f32

    # ---- fused QKV projection: one (TS*B, Cin) @ (Cin, 3C) MXU matmul ----
    qkv = jnp.dot(x_ref[...], wqkv_ref[...], preferred_element_type=jnp.float32)
    qkv = qkv + bqkv_ref[...]                                     # (M, 3C) f32

    # scale already folded into Wq / bq host-side
    q = qkv[:, 0 * C:1 * C].astype(mm_dtype).reshape(TS, B, C)
    k = qkv[:, 1 * C:2 * C].astype(mm_dtype).reshape(TS, B, C)
    v = qkv[:, 2 * C:3 * C].astype(mm_dtype).reshape(TS, B, C)

    # ---- per-head attention (tiny (TS,B,B) matmuls), batched over TS ----
    o_heads = []
    for h in range(nh):                          # nh is small; statically unrolled
        sl = slice(h * hd, (h + 1) * hd)
        qh, kh, vh = q[..., sl], k[..., sl], v[..., sl]           # (TS, B, hd)
        s = jnp.einsum('tqd,tkd->tqk', qh, kh,
                       preferred_element_type=jnp.float32)        # (TS, B, B)
        s = s - jnp.max(s, axis=-1, keepdims=True)                # f32 softmax
        p = jnp.exp(s)
        p = p * pl.reciprocal(jnp.sum(p, axis=-1, keepdims=True), approx=True)
        oh = jnp.einsum('tqk,tkd->tqd', p.astype(mm_dtype), vh,
                        preferred_element_type=jnp.float32)       # (TS, B, hd)
        o_heads.append(oh.astype(mm_dtype))

    # ---- ONE full-width output projection (K = C, not hd) ----
    o_all = jnp.concatenate(o_heads, axis=-1).reshape(M, C)       # (M, C)
    out = jnp.dot(o_all, wo_ref[...], preferred_element_type=jnp.float32)
    out = out + bo_ref[...]
    o_ref[...] = out.astype(o_ref.dtype)                          # lane-dense store


def attention_block(x, in_proj_w, in_proj_b, out_proj_w, out_proj_b, num_heads,
                    *, block_s=None, use_bf16=False):
    """x: (B, C, H, W).  Mirrors Attention_Block.forward exactly.

    use_bf16=True feeds bf16 to the MXU (valid on v5e/v6e/v7x); accumulation and
    the softmax stay in f32.
    """
    B, C, H, W = x.shape
    S = H * W
    assert C % num_heads == 0
    hd = C // num_heads
    scale = 1.0 / math.sqrt(hd)

    compute_dtype = jnp.bfloat16 if use_bf16 else x.dtype
    isz = jnp.dtype(compute_dtype).itemsize
    osz = jnp.dtype(x.dtype).itemsize

    LANE, SUB = 128, 8
    cin_pad = _round_up(C, LANE)       # lane-dense x block
    cout_pad = _round_up(C, LANE)      # lane-dense out block (unmasked stores)

    # ---- weights (prepared once): fused QKV with 1/sqrt(hd) folded into the Q
    # columns; full-width Wo for a single K=C output GEMM; zero padding so the
    # padded channels contribute exactly nothing. ----
    w_q, w_k, w_v = in_proj_w[:C], in_proj_w[C:2 * C], in_proj_w[2 * C:]
    b_q, b_k, b_v = in_proj_b[:C], in_proj_b[C:2 * C], in_proj_b[2 * C:]
    w_qkv = jnp.concatenate([w_q * scale, w_k, w_v], axis=0).T           # (C, 3C)
    b_qkv = jnp.concatenate([b_q * scale, b_k, b_v]).reshape(1, 3 * C)
    if cin_pad != C:
        w_qkv = jnp.pad(w_qkv, ((0, cin_pad - C), (0, 0)))
    w_o = out_proj_w.T                                                   # (C, C)
    b_o = out_proj_b.reshape(1, C)
    if cout_pad != C:
        w_o = jnp.pad(w_o, ((0, 0), (0, cout_pad - C)))
        b_o = jnp.pad(b_o, ((0, 0), (0, cout_pad - C)))
    w_qkv = w_qkv.astype(compute_dtype)
    w_o = w_o.astype(compute_dtype)
    b_qkv = b_qkv.astype(jnp.float32)
    b_o = b_o.astype(jnp.float32)

    # ---- activations: ONE fused transpose (B,C,H,W) -> (S,B,C), lane-pad C,
    # then hand the kernel a flat 2-D (S*B, Cin_pad) slab so the projection GEMM
    # and the output store need no in-kernel reshapes. ----
    x_seq = jnp.transpose(x.reshape(B, C, S), (2, 0, 1))                 # (S,B,C)
    if cin_pad != C:
        x_seq = jnp.pad(x_seq, ((0, 0), (0, 0), (0, cin_pad - C)))
    x_seq = x_seq.astype(compute_dtype)
    # TODO(synk): for v5e, fold the NCHW<->(S,B,C) transposes into the kernel to
    # save two HBM round trips over the activation map.

    # ---- tile sizing: M = TS*B rows per grid step.  Big enough to feed the MXU
    # (M >= 256) and amortize ~0.35us/step, small enough to fit VMEM counting the
    # f32 intermediates and double-buffered tiles/weights. ----
    per_row = (2 * cin_pad * isz          # x tile, double buffered
               + 2 * cout_pad * osz       # out tile, double buffered
               + 3 * C * 4                # qkv (f32)
               + 3 * C * isz              # q/k/v casts
               + 2 * C * isz              # head outputs + concat
               + cout_pad * 4)            # f32 out before the final cast
    w_bytes = (2 * (cin_pad * 3 * C + C * cout_pad) * isz                # 2x: double buffered
               + 2 * (3 * C + cout_pad) * 4)
    # TODO(synk): single-buffer the grid-invariant weight blocks (pl.Buffered(1)
    # or whole-array VMEM residency) once verified on the target jax version.
    try:
        vmem_cap = int(pltpu.get_tpu_info().vmem_capacity_bytes)
    except Exception:
        vmem_cap = 64 << 20               # conservative: v7x per-TC VMEM
    vmem_cap = min(max(vmem_cap, 64 << 20), 128 << 20)
    data_budget = max((vmem_cap * 3) // 5 - w_bytes, 4 << 20)

    if block_s is None:
        ts = data_budget // max(per_row * B, 1)
        ts = max(ts, pl.cdiv(256, B))     # keep the GEMM M dim >= 256 when possible
        ts = min(ts, 4096)
        block_s = int(ts)
    TS = max(SUB, min(int(block_s), _round_up(S, SUB)))
    TS = _round_up(TS, SUB)               # TS*B multiple of 8 for any B
    while TS > SUB and TS * B * per_row + w_bytes > vmem_cap - (8 << 20):
        TS -= SUB                         # shrink if the floor overshot VMEM

    num_tiles = pl.cdiv(S, TS)
    if num_tiles > 1 and num_tiles % 2 == 1:
        # prefer an even grid so v7x's two TensorCores stay balanced
        ts_alt = _round_up(pl.cdiv(S, num_tiles + 1), SUB)
        if pl.cdiv(S, ts_alt) % 2 == 0:
            TS = ts_alt
            num_tiles = pl.cdiv(S, TS)
    S_pad = num_tiles * TS
    if S_pad != S:
        # padded positions are independent garbage rows; sliced off below
        x_seq = jnp.pad(x_seq, ((0, S_pad - S), (0, 0), (0, 0)))
    x2d = x_seq.reshape(S_pad * B, cin_pad)

    est = TS * B * per_row + w_bytes + (8 << 20)
    vmem_limit = int(min(max(est, 32 << 20), vmem_cap - (8 << 20)))

    out2d = pl.pallas_call(
        functools.partial(mha_kernel, num_heads=num_heads, batch=B),
        out_shape=jax.ShapeDtypeStruct((S_pad * B, cout_pad), x.dtype),
        grid=(num_tiles,),
        in_specs=[
            pl.BlockSpec((TS * B, cin_pad), lambda s: (s, 0)),        # x tile
            pl.BlockSpec((cin_pad, 3 * C), lambda s: (0, 0)),         # fused Wqkv
            pl.BlockSpec((1, 3 * C), lambda s: (0, 0)),               # fused bqkv
            pl.BlockSpec((C, cout_pad), lambda s: (0, 0)),            # Wo (full K=C)
            pl.BlockSpec((1, cout_pad), lambda s: (0, 0)),            # bo
        ],
        out_specs=pl.BlockSpec((TS * B, cout_pad), lambda s: (s, 0)),
        compiler_params=pltpu.CompilerParams(
            dimension_semantics=("parallel",),
            vmem_limit_bytes=vmem_limit,
        ),
    )(x2d, w_qkv, b_qkv, w_o, b_o)

    # un-pad, then ONE fused transpose back: (S,B,C) -> (B,C,H,W)
    out_seq = out2d.reshape(S_pad, B, cout_pad)[:S, :, :C]
    return jnp.transpose(out_seq.reshape(H, W, B, C), (2, 3, 0, 1))


def attention_block_ref(x, in_proj_w, in_proj_b, out_proj_w, out_proj_b, num_heads):
    """Pure-JAX reference reproducing torch.nn.MultiheadAttention semantics."""
    B, C, H, W = x.shape
    S = H * W
    x_seq = jnp.transpose(x, (0, 2, 3, 1)).reshape(B, S, C).transpose(1, 0, 2)  # (S,B,C)
    N, L, E = x_seq.shape                      # N=S (batch), L=B (seq), E=C
    hd = E // num_heads
    qkv = x_seq @ in_proj_w.T + in_proj_b      # (N, L, 3E)
    q, k, v = jnp.split(qkv, 3, axis=-1)

    def split_heads(t):
        return t.reshape(N, L, num_heads, hd).transpose(0, 2, 1, 3)   # (N, nh, L, hd)

    q, k, v = split_heads(q), split_heads(k), split_heads(v)
    scores = jnp.einsum('nhld,nhmd->nhlm', q, k) / math.sqrt(hd)
    probs = jax.nn.softmax(scores, axis=-1)
    o = jnp.einsum('nhlm,nhmd->nhld', probs, v)
    o = o.transpose(0, 2, 1, 3).reshape(N, L, E)
    o = o @ out_proj_w.T + out_proj_b
    return o.transpose(1, 0, 2).reshape(B, H, W, C).transpose(0, 3, 1, 2)


if __name__ == "__main__":
    B, C, H, W = 2, 8, 4, 4
    num_heads = 2

    key = jax.random.PRNGKey(0)
    kx, kw_in, kb_in, kw_out, kb_out = jax.random.split(key, 5)

    x = jax.random.normal(kx, (B, C, H, W), dtype=jnp.float32)
    # Deterministic synthetic parameters (shapes match nn.MultiheadAttention(C, nh)).
    in_proj_w = jax.random.normal(kw_in, (3 * C, C), dtype=jnp.float32) * 0.1
    in_proj_b = jax.random.normal(kb_in, (3 * C,), dtype=jnp.float32) * 0.1
    out_proj_w = jax.random.normal(kw_out, (C, C), dtype=jnp.float32) * 0.1
    out_proj_b = jax.random.normal(kb_out, (C,), dtype=jnp.float32) * 0.1

    out = attention_block(x, in_proj_w, in_proj_b, out_proj_w, out_proj_b, num_heads)
    out = jax.block_until_ready(out)

    ref = attention_block_ref(x, in_proj_w, in_proj_b, out_proj_w, out_proj_b, num_heads)
    # Tolerance accounts for the EUP approximate reciprocal in the softmax normalizer.
    np.testing.assert_allclose(np.asarray(out), np.asarray(ref), rtol=2e-3, atol=2e-3)
    assert out.shape == (B, C, H, W)
    print("KERNEL_OK")
</pallas_src>

<mosaic_0001>
module attributes {stable_mosaic.version = 11 : i64} {
  func.func @mha_kernel(%arg0: i32, %arg1: memref<32x128xf32, #tpu.memory_space<vmem>>, %arg2: memref<128x24xf32, #tpu.memory_space<vmem>>, %arg3: memref<1x24xf32, #tpu.memory_space<vmem>>, %arg4: memref<8x128xf32, #tpu.memory_space<vmem>>, %arg5: memref<1x128xf32, #tpu.memory_space<vmem>>, %arg6: memref<32x128xf32, #tpu.memory_space<vmem>>) attributes {dimension_semantics = [#tpu.dimension_semantics<parallel>], iteration_bounds = array<i64: 1>, scalar_prefetch = 0 : i64, scratch_operands = 0 : i64, tpu.core_type = #tpu.core_type<tc>, window_params = [{transform_indices = @transform_0, window_bounds = array<i64: 32, 128>}, {pipeline_mode = #tpu.pipeline_mode<synchronous>, transform_indices = @transform_1, window_bounds = array<i64: 128, 24>}, {pipeline_mode = #tpu.pipeline_mode<synchronous>, transform_indices = @transform_2, window_bounds = array<i64: 1, 24>}, {pipeline_mode = #tpu.pipeline_mode<synchronous>, transform_indices = @transform_3, window_bounds = array<i64: 8, 128>}, {pipeline_mode = #tpu.pipeline_mode<synchronous>, transform_indices = @transform_4, window_bounds = array<i64: 1, 128>}, {transform_indices = @transform_5, window_bounds = array<i64: 32, 128>}]} {
    %c0 = arith.constant 0 : index
    %c0_0 = arith.constant 0 : index
    %0 = vector.load %arg1[%c0, %c0_0] : memref<32x128xf32, #tpu.memory_space<vmem>>, vector<32x128xf32>
    %c0_1 = arith.constant 0 : index
    %c0_2 = arith.constant 0 : index
    %1 = vector.load %arg2[%c0_1, %c0_2] : memref<128x24xf32, #tpu.memory_space<vmem>>, vector<128x24xf32>
    %cst = arith.constant dense<0.000000e+00> : vector<32x24xf32>
    %2 = tpu.matmul %0, %1, %cst {dimension_numbers = #tpu.dot_dimension_numbers<[1], [0], [0], [1], [0, 0, 1, 1], [], []>} : vector<32x128xf32>, vector<128x24xf32>, vector<32x24xf32> -> vector<32x24xf32>
    %c0_3 = arith.constant 0 : index
    %c0_4 = arith.constant 0 : index
    %3 = vector.load %arg3[%c0_3, %c0_4] : memref<1x24xf32, #tpu.memory_space<vmem>>, vector<1x24xf32>
    %4 = vector.broadcast %3 : vector<1x24xf32> to vector<32x24xf32>
    %5 = arith.addf %2, %4 : vector<32x24xf32>
    %6 = vector.extract_strided_slice %5 {offsets = [0, 0], sizes = [32, 8], strides = [1, 1]} : vector<32x24xf32> to vector<32x8xf32>
    %7 = vector.shape_cast %6 : vector<32x8xf32> to vector<16x2x8xf32>
    %8 = vector.extract_strided_slice %5 {offsets = [0, 8], sizes = [32, 8], strides = [1, 1]} : vector<32x24xf32> to vector<32x8xf32>
    %9 = vector.shape_cast %8 : vector<32x8xf32> to vector<16x2x8xf32>
    %10 = vector.extract_strided_slice %5 {offsets = [0, 16], sizes = [32, 8], strides = [1, 1]} : vector<32x24xf32> to vector<32x8xf32>
    %11 = vector.shape_cast %10 : vector<32x8xf32> to vector<16x2x8xf32>
    %12 = vector.extract_strided_slice %7 {offsets = [0, 0, 0], sizes = [16, 2, 4], strides = [1, 1, 1]} : vector<16x2x8xf32> to vector<16x2x4xf32>
    %13 = vector.extract_strided_slice %9 {offsets = [0, 0, 0], sizes = [16, 2, 4], strides = [1, 1, 1]} : vector<16x2x8xf32> to vector<16x2x4xf32>
    %14 = vector.extract_strided_slice %11 {offsets = [0, 0, 0], sizes = [16, 2, 4], strides = [1, 1, 1]} : vector<16x2x8xf32> to vector<16x2x4xf32>
    "tpu.trace_start"() <{level = 10 : i32, message = "tqd,tkd->tqk"}> : () -> ()
    %cst_5 = arith.constant dense<0.000000e+00> : vector<16x2x2xf32>
    %15 = tpu.matmul %12, %13, %cst_5 {dimension_numbers = #tpu.dot_dimension_numbers<[2], [2], [1], [1], [0, 0, 0, 1, 1, 1], [0], [0]>} : vector<16x2x4xf32>, vector<16x2x4xf32>, vector<16x2x2xf32> -> vector<16x2x2xf32>
    "tpu.trace_stop"() : () -> ()
    %cst_6 = arith.constant dense<0xFF800000> : vector<16x2xf32>
    %16 = vector.multi_reduction <maximumf>, %15, %cst_6 [2] : vector<16x2x2xf32> to vector<16x2xf32>
    %17 = vector.shape_cast %16 : vector<16x2xf32> to vector<16x2x1xf32>
    %18 = vector.broadcast %17 : vector<16x2x1xf32> to vector<16x2x2xf32>
    %19 = arith.subf %15, %18 : vector<16x2x2xf32>
    %20 = math.exp %19 : vector<16x2x2xf32>
    %cst_7 = arith.constant dense<0.000000e+00> : vector<16x2xf32>
    %21 = vector.multi_reduction <add>, %20, %cst_7 [2] : vector<16x2x2xf32> to vector<16x2xf32>
    %22 = vector.shape_cast %21 : vector<16x2xf32> to vector<16x2x1xf32>
    %23 = tpu.reciprocal %22 {approx = true} : vector<16x2x1xf32> -> vector<16x2x1xf32>
    %24 = vector.broadcast %23 : vector<16x2x1xf32> to vector<16x2x2xf32>
    %25 = arith.mulf %20, %24 : vector<16x2x2xf32>
    "tpu.trace_start"() <{level = 10 : i32, message = "tqk,tkd->tqd"}> : () -> ()
    %cst_8 = arith.constant dense<0.000000e+00> : vector<16x2x4xf32>
    %26 = tpu.matmul %25, %14, %cst_8 {dimension_numbers = #tpu.dot_dimension_numbers<[2], [1], [1], [2], [0, 0, 0, 1, 1, 2], [0], [0]>} : vector<16x2x2xf32>, vector<16x2x4xf32>, vector<16x2x4xf32> -> vector<16x2x4xf32>
    "tpu.trace_stop"() : () -> ()
    %27 = vector.extract_strided_slice %7 {offsets = [0, 0, 4], sizes = [16, 2, 4], strides = [1, 1, 1]} : vector<16x2x8xf32> to vector<16x2x4xf32>
    %28 = vector.extract_strided_slice %9 {offsets = [0, 0, 4], sizes = [16, 2, 4], strides = [1, 1, 1]} : vector<16x2x8xf32> to vector<16x2x4xf32>
    %29 = vector.extract_strided_slice %11 {offsets = [0, 0, 4], sizes = [16, 2, 4], strides = [1, 1, 1]} : vector<16x2x8xf32> to vector<16x2x4xf32>
    "tpu.trace_start"() <{level = 10 : i32, message = "tqd,tkd->tqk"}> : () -> ()
    %cst_9 = arith.constant dense<0.000000e+00> : vector<16x2x2xf32>
    %30 = tpu.matmul %27, %28, %cst_9 {dimension_numbers = #tpu.dot_dimension_numbers<[2], [2], [1], [1], [0, 0, 0, 1, 1, 1], [0], [0]>} : vector<16x2x4xf32>, vector<16x2x4xf32>, vector<16x2x2xf32> -> vector<16x2x2xf32>
    "tpu.trace_stop"() : () -> ()
    %cst_10 = arith.constant dense<0xFF800000> : vector<16x2xf32>
    %31 = vector.multi_reduction <maximumf>, %30, %cst_10 [2] : vector<16x2x2xf32> to vector<16x2xf32>
    %32 = vector.shape_cast %31 : vector<16x2xf32> to vector<16x2x1xf32>
    %33 = vector.broadcast %32 : vector<16x2x1xf32> to vector<16x2x2xf32>
    %34 = arith.subf %30, %33 : vector<16x2x2xf32>
    %35 = math.exp %34 : vector<16x2x2xf32>
    %cst_11 = arith.constant dense<0.000000e+00> : vector<16x2xf32>
    %36 = vector.multi_reduction <add>, %35, %cst_11 [2] : vector<16x2x2xf32> to vector<16x2xf32>
    %37 = vector.shape_cast %36 : vector<16x2xf32> to vector<16x2x1xf32>
    %38 = tpu.reciprocal %37 {approx = true} : vector<16x2x1xf32> -> vector<16x2x1xf32>
    %39 = vector.broadcast %38 : vector<16x2x1xf32> to vector<16x2x2xf32>
    %40 = arith.mulf %35, %39 : vector<16x2x2xf32>
    "tpu.trace_start"() <{level = 10 : i32, message = "tqk,tkd->tqd"}> : () -> ()
    %cst_12 = arith.constant dense<0.000000e+00> : vector<16x2x4xf32>
    %41 = tpu.matmul %40, %29, %cst_12 {dimension_numbers = #tpu.dot_dimension_numbers<[2], [1], [1], [2], [0, 0, 0, 1, 1, 2], [0], [0]>} : vector<16x2x2xf32>, vector<16x2x4xf32>, vector<16x2x4xf32> -> vector<16x2x4xf32>
    "tpu.trace_stop"() : () -> ()
    %42 = tpu.concatenate %26, %41 in 2 : vector<16x2x4xf32>, vector<16x2x4xf32> -> vector<16x2x8xf32>
    %43 = vector.shape_cast %42 : vector<16x2x8xf32> to vector<32x8xf32>
    %c0_13 = arith.constant 0 : index
    %c0_14 = arith.constant 0 : index
    %44 = vector.load %arg4[%c0_13, %c0_14] : memref<8x128xf32, #tpu.memory_space<vmem>>, vector<8x128xf32>
    %cst_15 = arith.constant dense<0.000000e+00> : vector<32x128xf32>
    %45 = tpu.matmul %43, %44, %cst_15 {dimension_numbers = #tpu.dot_dimension_numbers<[1], [0], [0], [1], [0, 0, 1, 1], [], []>} : vector<32x8xf32>, vector<8x128xf32>, vector<32x128xf32> -> vector<32x128xf32>
    %c0_16 = arith.constant 0 : index
    %c0_17 = arith.constant 0 : index
    %46 = vector.load %arg5[%c0_16, %c0_17] : memref<1x128xf32, #tpu.memory_space<vmem>>, vector<1x128xf32>
    %47 = vector.broadcast %46 : vector<1x128xf32> to vector<32x128xf32>
    %48 = arith.addf %45, %47 : vector<32x128xf32>
    %c0_18 = arith.constant 0 : index
    %c0_19 = arith.constant 0 : index
    %49 = vector.load %arg6[%c0_18, %c0_19] : memref<32x128xf32, #tpu.memory_space<vmem>>, vector<32x128xf32>
    tpu.vector_store %arg6[%c0_18, %c0_19], %48 {strides = array<i32>} : memref<32x128xf32, #tpu.memory_space<vmem>>, vector<32x128xf32>,
    return
  }
  func.func @transform_0(%arg0: i32) -> (i32, i32) {
    %c0_i32 = arith.constant 0 : i32
    %c0_i32_0 = arith.constant 0 : i32
    return %arg0, %c0_i32 : i32, i32
  }
  func.func @transform_1(%arg0: i32) -> (i32, i32) {
    %c0_i32 = arith.constant 0 : i32
    %c0_i32_0 = arith.constant 0 : i32
    %c0_i32_1 = arith.constant 0 : i32
    return %c0_i32, %c0_i32_0 : i32, i32
  }
  func.func @transform_2(%arg0: i32) -> (i32, i32) {
    %c0_i32 = arith.constant 0 : i32
    %c0_i32_0 = arith.constant 0 : i32
    %c0_i32_1 = arith.constant 0 : i32
    return %c0_i32, %c0_i32_0 : i32, i32
  }
  func.func @transform_3(%arg0: i32) -> (i32, i32) {
    %c0_i32 = arith.constant 0 : i32
    %c0_i32_0 = arith.constant 0 : i32
    %c0_i32_1 = arith.constant 0 : i32
    return %c0_i32, %c0_i32_0 : i32, i32
  }
  func.func @transform_4(%arg0: i32) -> (i32, i32) {
    %c0_i32 = arith.constant 0 : i32
    %c0_i32_0 = arith.constant 0 : i32
    %c0_i32_1 = arith.constant 0 : i32
    return %c0_i32, %c0_i32_0 : i32, i32
  }
  func.func @transform_5(%arg0: i32) -> (i32, i32) {
    %c0_i32 = arith.constant 0 : i32
    %c0_i32_0 = arith.constant 0 : i32
    return %arg0, %c0_i32 : i32, i32
  }
}

</mosaic_0001>

<bundles_post_ra>
// kernel: tpu_custom_call.1
= control target key start
LH: loop header
LB: loop body
LE: loop exit
PB: predicated region body
PF: predicated region fallthrough
CT: control target
= control target key end

     0   :  { %s7969_s0 = inlined_call_operand.vmem [shape: f32[32,128], index: 0, kind: input, shape index: {}]   ;;  %s7970_s1 = inlined_call_operand.vmem [shape: f32[128,24], index: 1, kind: input, shape index: {}]   ;;  %s7971_s2 = inlined_call_operand.vmem [shape: f32[1,24], index: 2, kind: input, shape index: {}]   ;;  %s7972_s3 = inlined_call_operand.vmem [shape: f32[8,128], index: 3, kind: input, shape index: {}]   ;;  %s7973_s4 = inlined_call_operand.vmem [shape: f32[1,128], index: 4, kind: input, shape index: {}]   ;;  %s7974_s5 = inlined_call_operand.hbm [shape: f32[32,128], index: 5, kind: output, shape index: {}]  }
   0x1   :  { %v25_v0 = vld [vmem:[%s7970_s1] sm:$0xff]  ;;  %v26_v1 = vld [vmem:[%s7970_s1 + $0x8] sm:$0xff]  ;;  %v27_v2 = vld [vmem:[%s7970_s1 + $0x10] sm:$0xff] }
   0x2   :  { %v6540_v3 = vpack.c.bf16 %v26_v1, %v25_v0  ;;  %v28_v4 = vld [vmem:[%s7970_s1 + $0x18] sm:$0xff]  ;;  %v29_v6 = vld [vmem:[%s7970_s1 + $0x20] sm:$0xff]  ;;  %v30_v7 = vld [vmem:[%s7970_s1 + $0x28] sm:$0xff] }
   0x3   :  { %v6544_v5 = vpack.c.bf16 %v28_v4, %v27_v2  ;;  %v6548_v8 = vpack.c.bf16 %v30_v7, %v29_v6  ;;  %v21_v9 = vld [vmem:[%s7969_s0] sm:$0xff]  ;;  %v31_v10 = vld [vmem:[%s7970_s1 + $0x30] sm:$0xff]  ;;  %v32_v11 = vld [vmem:[%s7970_s1 + $0x38] sm:$0xff] }
   0x4   :  { %6541 = vmatprep.subr.bf16.mxu0 %v6540_v3  ;;  %6206 = vmatprep.mubr.f32.mxu0 %v21_v9 }
   0x5   :  { %6543 = vmatpush3.bf16.msra.mxu0 %v6540_v3 }
   0x6   :  { %6545 = vmatprep.subr.bf16.mxu0 %v6544_v5 }
   0x7   :  { %10 = vsyncpa [#allocation3], 0  ;;  %v6552_v12 = vpack.c.bf16 %v32_v11, %v31_v10  ;;  %v33_v13 = vld [vmem:[%s7970_s1 + $0x40] sm:$0xff]  ;;  %v34_v14 = vld [vmem:[%s7970_s1 + $0x48] sm:$0xff]  ;;  %v6736_v28 = vmov 0.0   ;;  %v141_v31 = vlaneseq  ;;  %vm6738_vm0 = vmmov 0  }
   0x8   :  { %v6556_v15 = vpack.c.bf16 %v34_v14, %v33_v13  ;;  %v35_v16 = vld [vmem:[%s7970_s1 + $0x50] sm:$0xff]  ;;  %v36_v17 = vld [vmem:[%s7970_s1 + $0x58] sm:$0xff]  ;;  %v37_v19 = vld [vmem:[%s7970_s1 + $0x60] sm:$0xff]  ;;  %6212 = vmatprep.subr.mxu1 %v6736_v28  ;;  %v6737_v29 = vmov 1983009808   ;;  %6214 = vmatprep.mubr.msk.f32.mxu1 %vm6738_vm0, %v6736_v28  ;;  %s6740_s8 = smov 112  }
   0x9   :  { %6547 = vmatpush3.bf16.msra.mxu0 %v6544_v5  ;;  %v6560_v18 = vpack.c.bf16 %v36_v17, %v35_v16  ;;  %v38_v20 = vld [vmem:[%s7970_s1 + $0x68] sm:$0xff]  ;;  %v39_v22 = vld [vmem:[%s7970_s1 + $0x70] sm:$0xff]  ;;  %v40_v23 = vld [vmem:[%s7970_s1 + $0x78] sm:$0xff]  ;;  %v139_v30 = vunpack.c.l.s4 %v6737_v29  ;;  %v142_v33 = vshrl.u32 %v141_v31, 7  ;;  %vm214_vm1 = vcmask 31744   ;;  %s6741_s9 = smov 116  }
   0xa   :  { %6549 = vmatprep.subr.bf16.mxu0 %v6548_v8  ;;  %v6564_v21 = vpack.c.bf16 %v38_v20, %v37_v19  ;;  %v6568_v24 = vpack.c.bf16 %v40_v23, %v39_v22  ;;  %v22_v25 = vld [vmem:[%s7969_s0 + $0x8] sm:$0xff]  ;;  %v23_v26 = vld [vmem:[%s7969_s0 + $0x10] sm:$0xff]  ;;  %v24_v27 = vld [vmem:[%s7969_s0 + $0x18] sm:$0xff]  ;;  %vm1717_vm2 = vcmask 1041408   ;;  %vm1534_vm3 = vcmask 9216   ;;  %s6742_s10 = smov 124  }
   0xb   :  { %v140_v32 = vunpack.c.0.s8 %v139_v30  ;;  %v5887_v34 = vld [vmem:[%s7971_s2] ss:$0 sm:$0xff]  ;;  %s6739_s2 = smov 120   ;;  %s6743_s11 = smov 108   ;;  %vm1713_vm4 = vcmask 15360   ;;  %vm5773_vm5 = vcmask 64512  }
   0xc   :  { %s6744_s12 = smov 4   ;;  %s6745_s16 = smov [#allocation2]  }
   0xd   :  { %6551 = vmatpush3.bf16.msra.mxu0 %v6548_v8  ;;  %v6847_v36 = vsub.s32 %v140_v32, %v142_v33  ;;  %s5876_s17 = sshll.u32 %s6745_s16, 4  ;;  %s5877_s17 = int_to_ptr.vmem [resolvable:$true] %s5876_s17 }
   0xe   :  { %6553 = vmatprep.subr.bf16.mxu0 %v6552_v12  ;;  %s6712_s18 = scalar_lea.vmem %s5877_s17, 512  ;;  %p6717_p1 = scmp.lt.s32.totalorder %s5877_s17, %s5877_s17 }
   0xf   :  { %p6713_p0 = scmp.ne.s32.totalorder %s5877_s17, %s6712_s18  ;;  %p6718_p2 = scmp.lt.s32.totalorder %s6712_s18, %s6712_s18 }
  0x11   :  { %6555 = vmatpush3.bf16.msra.mxu0 %v6552_v12  ;;  %p6719_p3 = por %p6718_p2, %p6717_p1 }
  0x12   :  { %6557 = vmatprep.subr.bf16.mxu0 %v6556_v15 }
  0x13   :  { %p6720_p4 = pnand %p6719_p3, %p6713_p0 }
  0x15   :  { %6559 = vmatpush3.bf16.msra.mxu0 %v6556_v15 }
  0x16   :  { %6561 = vmatprep.subr.bf16.mxu0 %v6560_v18 }
  0x19   :  { %6563 = vmatpush3.bf16.msra.mxu0 %v6560_v18 }
  0x1a   :  { %6565 = vmatprep.subr.bf16.mxu0 %v6564_v21 }
  0x1d   :  { %6567 = vmatpush3.bf16.msra.mxu0 %v6564_v21 }
  0x1e   :  { %6569 = vmatprep.subr.bf16.mxu0 %v6568_v24 }
  0x21   :  { %6571 = vmatpush3.bf16.msra.mxu0 %v6568_v24 }
  0x22   :  { %6257 = vmatprep.subr.mxu0 %v6736_v28 }
  0x24   :  { %6207 = vmatmul.mubr.f32.vlgmr.msra.gmra.mrb[0].mxu0 %v22_v25 }
  0x25   :  { %6209 = vmatprep.mubr.f32.mxu0 %v23_v26 }
  0x28   :  { %6210 = vmatmul.mubr.f32.gmra.mrb[2].mxu0 %v24_v27 }
  0x29   :  { %6259 = vmatprep.mubr.msk.f32.mxu0 %vm6738_vm0, %v6736_v28 }
  0xf7   :  { %v6208_v35 = vpop.f32.mrb[0].mxu0 }
  0xf8   :  { %v114_v37 = vpop.f32.mrb[1].mxu0  ;;  %v120_v39 = vadd.f32 %v6208_v35, %v5887_v34 }
  0xf9   :  { %v115_v38 = vadd.f32 %v5887_v34, %v114_v37 }
  0xfa   :  { %v154_v47 = vcombine.high %v120_v39, %v120_v39  ;;  %v6864_v48 = vrot.slane %v120_v39, %v6847_v36 }
  0xfb   :  { %v137_v40 = vcombine.high %v115_v38, %v115_v38  ;;  %v6850_v41 = vrot.slane %v115_v38, %v6847_v36  ;;  %v6211_v42 = vpop.f32.mrb[2].mxu0 }
  0xfc   :  { %v124_v43 = vpop.f32.mrb[3].mxu0  ;;  %v6883_v53 = vrot.slane %v154_v47, %v6847_v36  ;;  %v6887_v54 = vcombine.high %v6864_v48, %v6864_v48  ;;  %v6897_v56 = vrot.slane %v6864_v48, %v6847_v36  ;;  %v130_v0 = vadd.f32 %v6211_v42, %v5887_v34 }
  0xfd   :  { %v6853_v44 = vrot.slane %v137_v40, %v6847_v36  ;;  %v6857_v45 = vcombine.high %v6850_v41, %v6850_v41  ;;  %v6861_v46 = vrot.slane %v6850_v41, %v6847_v36  ;;  %v125_v52 = vadd.f32 %v5887_v34, %v124_v43 }
  0xfe   :  { %v6906_v58 = vcombine.high %v6883_v53, %v6883_v53  ;;  %v6910_v59 = vrot.slane %v6887_v54, %v6847_v36  ;;  %v6916_v61 = vrot.slane %v6883_v53, %v6847_v36  ;;  %v188_v4 = vcombine.high %v130_v0, %v130_v0 }
  0xff   :  { %v6868_v49 = vcombine.high %v6853_v44, %v6853_v44  ;;  %v6872_v50 = vrot.slane %v6853_v44, %v6847_v36  ;;  %212 = vrot.lane.b32.xlu0 %v6861_v46, %s6739_s2  ;;  %v6878_v51 = vrot.slane %v6857_v45, %v6847_v36  ;;  %v6902_v57 = vrot.slane %v125_v52, %v6847_v36 }
 0x100   :  { %v171_v60 = vcombine.high %v125_v52, %v125_v52  ;;  %v6926_v63 = vrot.slane %v6906_v58, %v6847_v36  ;;  %v6944_v5 = vrot.slane %v130_v0, %v6847_v36  ;;  %v6959_v8 = vrot.slane %v188_v4, %v6847_v36 }
 0x101   :  { %379 = vrot.lane.b32.xlu1 %v6872_v50, %s6739_s2  ;;  %v6891_v55 = vrot.slane %v6868_v49, %v6847_v36  ;;  %v6920_v62 = vcombine.high %v6902_v57, %v6902_v57  ;;  %v6933_v2 = vrot.slane %v6902_v57, %v6847_v36 }
 0x102   :  { %v6929_v1 = vrot.slane %v171_v60, %v6847_v36  ;;  %v6963_v9 = vcombine.high %v6944_v5, %v6944_v5  ;;  %v6973_v11 = vrot.slane %v6944_v5, %v6847_v36  ;;  %v6979_v12 = vcombine.high %v6959_v8, %v6959_v8 }
 0x103   :  { %296 = vrot.lane.b32.xlu0 %v6878_v51, %s6739_s2  ;;  %v6939_v3 = vrot.slane %v6920_v62, %v6847_v36  ;;  %v6989_v14 = vrot.slane %v6959_v8, %v6847_v36 }
 0x104   :  { %v6948_v6 = vcombine.high %v6929_v1, %v6929_v1  ;;  %v6954_v7 = vrot.slane %v6929_v1, %v6847_v36  ;;  %v6983_v13 = vrot.slane %v6963_v9, %v6847_v36  ;;  %v6995_v15 = vrot.slane %v6979_v12, %v6847_v36 }
 0x105   :  { %462 = vrot.lane.b32.xlu1 %v6891_v55, %s6739_s2 }
 0x106   :  { %v6967_v10 = vrot.slane %v6948_v6, %v6847_v36 }
 0x107   :  { %545 = vrot.lane.b32.xlu0 %v6897_v56, %s6739_s2 }
 0x109   :  { %628 = vrot.lane.b32.xlu1 %v6910_v59, %s6739_s2 }
 0x10b   :  { %711 = vrot.lane.b32.xlu0 %v6916_v61, %s6739_s2 }
 0x10d   :  { %794 = vrot.lane.b32.xlu1 %v6926_v63, %s6739_s2 }
 0x10f   :  { %877 = vrot.lane.b32.xlu0 %v6933_v2, %s6739_s2 }
 0x111   :  { %960 = vrot.lane.b32.xlu1 %v6939_v3, %s6739_s2 }
 0x113   :  { %1043 = vrot.lane.b32.xlu0 %v6954_v7, %s6739_s2 }
 0x115   :  { %1126 = vrot.lane.b32.xlu1 %v6967_v10, %s6739_s2 }
 0x117   :  { %1209 = vrot.lane.b32.xlu0 %v6973_v11, %s6739_s2 }
 0x119   :  { %1292 = vrot.lane.b32.xlu1 %v6983_v13, %s6739_s2 }
 0x11b   :  { %1375 = vrot.lane.b32.xlu0 %v6989_v14, %s6739_s2 }
 0x11d   :  { %1458 = vrot.lane.b32.xlu1 %v6995_v15, %s6739_s2 }
 0x11f   :  { %1790 = vrot.lane.b32.xlu0 %v6878_v51, %s6740_s8 }
 0x121   :  { %1711 = vrot.lane.b32.xlu1 %v6861_v46, %s6740_s8 }
 0x123   :  { %1944 = vrot.lane.b32.xlu0 %v6891_v55, %s6740_s8 }
 0x125   :  { %1867 = vrot.lane.b32.xlu1 %v6872_v50, %s6740_s8 }
 0x127   :  { %2175 = vrot.lane.b32.xlu0 %v6916_v61, %s6740_s8 }
 0x129   :  { %2021 = vrot.lane.b32.xlu1 %v6897_v56, %s6740_s8 }
 0x12b   :  { %2329 = vrot.lane.b32.xlu0 %v6933_v2, %s6740_s8 }
 0x12d   :  { %2098 = vrot.lane.b32.xlu1 %v6910_v59, %s6740_s8 }
 0x12f   :  { %2483 = vrot.lane.b32.xlu0 %v6954_v7, %s6740_s8 }
 0x131   :  { %2252 = vrot.lane.b32.xlu1 %v6926_v63, %s6740_s8 }
 0x133   :  { %2637 = vrot.lane.b32.xlu0 %v6973_v11, %s6740_s8 }
 0x135   :  { %2406 = vrot.lane.b32.xlu1 %v6939_v3, %s6740_s8 }
 0x137   :  { %2791 = vrot.lane.b32.xlu0 %v6989_v14, %s6740_s8 }
 0x139   :  { %2714 = vrot.lane.b32.xlu1 %v6983_v13, %s6740_s8 }
 0x13d   :  { %2868 = vrot.lane.b32.xlu1 %v6995_v15, %s6740_s8 }
 0x141   :  { %2560 = vrot.lane.b32.xlu1 %v6967_v10, %s6740_s8 }
 0x171   :  { %v213_v16 = vpop.permute.xlu0 %212 }
 0x172   :  { %6213 = vmatpush3.xpose.msk.msra.mxu1 %vm214_vm1, %v213_v16 }
 0x173   :  { %v380_v17 = vpop.permute.xlu1 %379  ;;  %6217 = vmatprep.subr.mxu1 %v6736_v28 }
 0x175   :  { %6215 = vmatmul.mubr.msk.f32.vlgmr.msra.gmra.mrb[0].mxu1 %vm214_vm1, %v6850_v41  ;;  %v297_v18 = vpop.permute.xlu0 %296 }
 0x176   :  { %6218 = vmatpush3.xpose.msk.msra.mxu1 %vm214_vm1, %v297_v18  ;;  %6219 = vmatprep.mubr.msk.f32.mxu1 %vm6738_vm0, %v6736_v28 }
 0x177   :  { %v463_v19 = vpop.permute.xlu1 %462  ;;  %6222 = vmatprep.subr.mxu1 %v6736_v28 }
 0x179   :  { %6220 = vmatmul.mubr.msk.f32.vlgmr.msra.gmra.mrb[2].mxu1 %vm214_vm1, %v6857_v45  ;;  %v546_v20 = vpop.permute.xlu0 %545 }
 0x17a   :  { %6223 = vmatpush3.xpose.msk.msra.mxu1 %vm214_vm1, %v380_v17  ;;  %6224 = vmatprep.mubr.msk.f32.mxu1 %vm6738_vm0, %v6736_v28 }
 0x17b   :  { %v629_v21 = vpop.permute.xlu1 %628  ;;  %6227 = vmatprep.subr.mxu1 %v6736_v28 }
 0x17d   :  { %v712_v22 = vpop.permute.xlu0 %711  ;;  %6225 = vmatmul.mubr.msk.f32.vlgmr.msra.gmra.mrb[4].mxu1 %vm214_vm1, %v6853_v44 }
 0x17e   :  { %6228 = vmatpush3.xpose.msk.msra.mxu1 %vm214_vm1, %v463_v19  ;;  %6229 = vmatprep.mubr.msk.f32.mxu1 %vm6738_vm0, %v6736_v28 }
 0x17f   :  { %v795_v23 = vpop.permute.xlu1 %794  ;;  %6232 = vmatprep.subr.mxu1 %v6736_v28 }
 0x181   :  { %v878_v24 = vpop.permute.xlu0 %877  ;;  %6230 = vmatmul.mubr.msk.f32.vlgmr.msra.gmra.mrb[6].mxu1 %vm214_vm1, %v6868_v49 }
 0x182   :  { %6233 = vmatpush3.xpose.msk.msra.mxu1 %vm214_vm1, %v546_v20  ;;  %6234 = vmatprep.mubr.msk.f32.mxu1 %vm6738_vm0, %v6736_v28 }
 0x183   :  { %v961_v25 = vpop.permute.xlu1 %960  ;;  %6237 = vmatprep.subr.mxu1 %v6736_v28 }
 0x184   :  { %6258 = vmatpush3.xpose.msk.msra.mxu0 %vm214_vm1, %v961_v25 }
 0x185   :  { %v1044_v26 = vpop.permute.xlu0 %1043  ;;  %6235 = vmatmul.mubr.msk.f32.vlgmr.msra.gmra.mrb[8].mxu1 %vm214_vm1, %v6864_v48  ;;  %6267 = vmatprep.subr.mxu0 %v6736_v28 }
 0x186   :  { %6238 = vmatpush3.xpose.msk.msra.mxu1 %vm214_vm1, %v629_v21  ;;  %6239 = vmatprep.mubr.msk.f32.mxu1 %vm6738_vm0, %v6736_v28 }
 0x187   :  { %6260 = vmatmul.mubr.msk.f32.vlgmr.msra.gmra.mrb[4].mxu0 %vm214_vm1, %v6920_v62  ;;  %v1127_v27 = vpop.permute.xlu1 %1126  ;;  %6242 = vmatprep.subr.mxu1 %v6736_v28 }
 0x188   :  { %6268 = vmatpush3.xpose.msk.msra.mxu0 %vm214_vm1, %v1127_v27  ;;  %6269 = vmatprep.mubr.msk.f32.mxu0 %vm6738_vm0, %v6736_v28 }
 0x189   :  { %v1210_v29 = vpop.permute.xlu0 %1209  ;;  %6240 = vmatmul.mubr.msk.f32.vlgmr.msra.gmra.mrb[10].mxu1 %vm214_vm1, %v6887_v54  ;;  %6277 = vmatprep.subr.mxu0 %v6736_v28 }
 0x18a   :  { %6243 = vmatpush3.xpose.msk.msra.mxu1 %vm214_vm1, %v712_v22  ;;  %6244 = vmatprep.mubr.msk.f32.mxu1 %vm6738_vm0, %v6736_v28 }
 0x18b   :  { %6270 = vmatmul.mubr.msk.f32.vlgmr.msra.gmra.mrb[6].mxu0 %vm214_vm1, %v6948_v6  ;;  %v1293_v30 = vpop.permute.xlu1 %1292  ;;  %6247 = vmatprep.subr.mxu1 %v6736_v28 }
 0x18c   :  { %6278 = vmatpush3.xpose.msk.msra.mxu0 %vm214_vm1, %v1293_v30  ;;  %6279 = vmatprep.mubr.msk.f32.mxu0 %vm6738_vm0, %v6736_v28 }
 0x18d   :  { %v1376_v31 = vpop.permute.xlu0 %1375  ;;  %6245 = vmatmul.mubr.msk.f32.vlgmr.msra.gmra.mrb[12].mxu1 %vm214_vm1, %v6883_v53  ;;  %6287 = vmatprep.subr.mxu0 %v6736_v28 }
 0x18e   :  { %6248 = vmatpush3.xpose.msk.msra.mxu1 %vm214_vm1, %v795_v23  ;;  %6249 = vmatprep.mubr.msk.f32.mxu1 %vm6738_vm0, %v6736_v28 }
 0x18f   :  { %6280 = vmatmul.mubr.msk.f32.vlgmr.msra.gmra.mrb[8].mxu0 %vm214_vm1, %v6963_v9  ;;  %v1459_v32 = vpop.permute.xlu1 %1458  ;;  %6252 = vmatprep.subr.mxu1 %v6736_v28 }
 0x190   :  { %6288 = vmatpush3.xpose.msk.msra.mxu0 %vm214_vm1, %v1459_v32  ;;  %6289 = vmatprep.mubr.msk.f32.mxu0 %vm6738_vm0, %v6736_v28 }
 0x191   :  { %6250 = vmatmul.mubr.msk.f32.vlgmr.msra.gmra.mrb[14].mxu1 %vm214_vm1, %v6906_v58  ;;  %6297 = vmatprep.subr.mxu0 %v6736_v28  ;;  %v1791_v33 = vpop.permute.xlu0 %1790 }
 0x192   :  { %6253 = vmatpush3.xpose.msk.msra.mxu1 %vm214_vm1, %v878_v24  ;;  %6254 = vmatprep.mubr.msk.f32.mxu1 %vm6738_vm0, %v6736_v28 }
 0x193   :  { %6290 = vmatmul.mubr.msk.f32.vlgmr.msra.gmra.mrb[10].mxu0 %vm214_vm1, %v6979_v12  ;;  %6262 = vmatprep.subr.mxu1 %v6736_v28  ;;  %v1712_v34 = vpop.permute.xlu1 %1711 }
 0x194   :  { %6298 = vmatpush3.msk.msra.mxu0 %vm1717_vm2, %v1791_v33  ;;  %6299 = vmatprep.mubr.msk.f32.mxu0 %vm6738_vm0, %v6736_v28 }
 0x195   :  { %6255 = vmatmul.mubr.msk.f32.vlgmr.msra.gmra.mrb[16].mxu1 %vm214_vm1, %v6902_v57  ;;  %6307 = vmatprep.subr.mxu0 %v6736_v28 }
 0x196   :  { %6263 = vmatpush3.xpose.msk.msra.mxu1 %vm214_vm1, %v1044_v26  ;;  %6264 = vmatprep.mubr.msk.f32.mxu1 %vm6738_vm0, %v6736_v28 }
 0x197   :  { %6272 = vmatprep.subr.mxu1 %v6736_v28 }
 0x199   :  { %6265 = vmatmul.mubr.msk.f32.vlgmr.msra.gmra.mrb[18].mxu1 %vm214_vm1, %v6929_v1 }
 0x19a   :  { %6273 = vmatpush3.xpose.msk.msra.mxu1 %vm214_vm1, %v1210_v29  ;;  %6274 = vmatprep.mubr.msk.f32.mxu1 %vm6738_vm0, %v6736_v28 }
 0x19b   :  { %6282 = vmatprep.subr.mxu1 %v6736_v28 }
 0x19d   :  { %6275 = vmatmul.mubr.msk.f32.vlgmr.msra.gmra.mrb[20].mxu1 %vm214_vm1, %v6944_v5 }
 0x19e   :  { %6283 = vmatpush3.xpose.msk.msra.mxu1 %vm214_vm1, %v1376_v31  ;;  %6284 = vmatprep.mubr.msk.f32.mxu1 %vm6738_vm0, %v6736_v28 }
 0x19f   :  { %6292 = vmatprep.subr.mxu1 %v6736_v28 }
 0x1a1   :  { %6285 = vmatmul.mubr.msk.f32.vlgmr.msra.gmra.mrb[22].mxu1 %vm214_vm1, %v6959_v8 }
 0x1a2   :  { %6293 = vmatpush3.msk.msra.mxu1 %vm1717_vm2, %v1712_v34  ;;  %6294 = vmatprep.mubr.msk.f32.mxu1 %vm6738_vm0, %v6736_v28 }
 0x1a3   :  { %6302 = vmatprep.subr.mxu1 %v6736_v28 }
 0x248   :  { %v7117_v35 = vpop.f32.mrb[0].mxu1 }
 0x249   :  { %v6216_v37 = vpop.f32.mrb[1].mxu1  ;;  %v1535_v38 = vsel %vm1534_vm3, %v7117_v35, -inf }
 0x24a   :  { %1536 = vmax.xlane.f32.xlu0 %v1535_v38 }
 0x24c   :  { %v7121_v39 = vpop.f32.mrb[2].mxu1 }
 0x24d   :  { %v6221_v40 = vpop.f32.mrb[3].mxu1  ;;  %v1538_v41 = vsel %vm1534_vm3, %v7121_v39, -inf }
 0x24e   :  { %1539 = vmax.xlane.f32.xlu1 %v1538_v41  ;;  %v7193_v40 = vpop.permute.xlu1 %1867 }
 0x250   :  { %v7125_v42 = vpop.f32.mrb[4].mxu1 }
 0x251   :  { %v6226_v43 = vpop.f32.mrb[5].mxu1  ;;  %v1541_v0 = vsel %vm1534_vm3, %v7125_v42, -inf }
 0x252   :  { %v7195_v41 = vpop.permute.xlu1 %2021  ;;  %v7197_v43 = vpop.permute.xlu0 %1944 }
 0x254   :  { %v7127_v44 = vpop.f32.mrb[6].mxu1 }
 0x255   :  { %v6231_v45 = vpop.f32.mrb[7].mxu1  ;;  %v1544_v19 = vsel %vm1534_vm3, %v7127_v44, -inf }
 0x256   :  { %v7199_v45 = vpop.permute.xlu1 %2098 }
 0x258   :  { %v7129_v47 = vpop.f32.mrb[8].mxu1 }
 0x259   :  { %v6236_v48 = vpop.f32.mrb[9].mxu1  ;;  %v1547_v49 = vsel %vm1534_vm3, %v7129_v47, -inf }
 0x25a   :  { %1548 = vmax.xlane.f32.xlu1 %v1547_v49  ;;  %v7133_v52 = vpop.f32.mrb[4].mxu0  ;;  %v7201_v48 = vpop.permute.xlu0 %2175 }
 0x25b   :  { %v6261_v53 = vpop.f32.mrb[5].mxu0  ;;  %v1562_v54 = vsel %vm1534_vm3, %v7133_v52, -inf  ;;  %v7203_v49 = vpop.permute.xlu1 %2252 }
 0x25c   :  { %v7137_v57 = vpop.f32.mrb[10].mxu1  ;;  %1563 = vmax.xlane.f32.xlu0 %v1562_v54 }
 0x25d   :  { %v6241_v58 = vpop.f32.mrb[11].mxu1  ;;  %v1550_v29 = vsel %vm1534_vm3, %v7137_v57, -inf }
 0x25e   :  { %v7139_v60 = vpop.f32.mrb[6].mxu0  ;;  %v7205_v53 = vpop.permute.xlu0 %2329 }
 0x25f   :  { %v6271_v62 = vpop.f32.mrb[7].mxu0  ;;  %v1568_v9 = vsel %vm1534_vm3, %v7139_v60, -inf  ;;  %v7207_v54 = vpop.permute.xlu1 %2406 }
 0x260   :  { %v7143_v1 = vpop.f32.mrb[12].mxu1  ;;  %1542 = vmax.xlane.f32.xlu0 %v1541_v0 }
 0x261   :  { %v6246_v4 = vpop.f32.mrb[13].mxu1  ;;  %v1553_v5 = vsel %vm1534_vm3, %v7143_v1, -inf }
 0x262   :  { %1554 = vmax.xlane.f32.xlu1 %v1553_v5  ;;  %v7147_v6 = vpop.f32.mrb[8].mxu0  ;;  %v7209_v58 = vpop.permute.xlu0 %2483 }
 0x263   :  { %v6281_v8 = vpop.f32.mrb[9].mxu0  ;;  %v1574_v22 = vsel %vm1534_vm3, %v7147_v6, -inf  ;;  %v7211_v62 = vpop.permute.xlu1 %2714 }
 0x264   :  { %v7151_v12 = vpop.f32.mrb[14].mxu1  ;;  %1569 = vmax.xlane.f32.xlu0 %v1568_v9 }
 0x265   :  { %v6251_v16 = vpop.f32.mrb[15].mxu1  ;;  %v1556_v32 = vsel %vm1534_vm3, %v7151_v12, -inf }
 0x266   :  { %v7153_v17 = vpop.f32.mrb[10].mxu0  ;;  %v7213_v0 = vpop.permute.xlu0 %2637 }
 0x267   :  { %v6291_v18 = vpop.f32.mrb[11].mxu0  ;;  %v1580_v25 = vsel %vm1534_vm3, %v7153_v17, -inf  ;;  %v7215_v4 = vpop.permute.xlu1 %2868 }
 0x268   :  { %v7157_v20 = vpop.f32.mrb[16].mxu1  ;;  %1545 = vmax.xlane.f32.xlu0 %v1544_v19 }
 0x269   :  { %v6256_v21 = vpop.f32.mrb[17].mxu1  ;;  %v1559_v33 = vsel %vm1534_vm3, %v7157_v20, -inf }
 0x26a   :  { %v7217_v5 = vpop.permute.xlu0 %2791 }
 0x26b   :  { %v7219_v8 = vpop.permute.xlu1 %2560 }
 0x26c   :  { %v7161_v23 = vpop.f32.mrb[18].mxu1  ;;  %1575 = vmax.xlane.f32.xlu0 %v1574_v22 }
 0x26d   :  { %v6266_v24 = vpop.f32.mrb[19].mxu1  ;;  %v1565_v34 = vsel %vm1534_vm3, %v7161_v23, -inf }
 0x270   :  { %v7165_v26 = vpop.f32.mrb[20].mxu1  ;;  %1581 = vmax.xlane.f32.xlu0 %v1580_v25 }
 0x271   :  { %v6276_v27 = vpop.f32.mrb[21].mxu1  ;;  %v1571_v37 = vsel %vm1534_vm3, %v7165_v26, -inf }
 0x273   :  { %3025 = vrot.lane.b32.xlu1 %v6878_v51, %s6741_s9 }
 0x274   :  { %v7171_v30 = vpop.f32.mrb[22].mxu1  ;;  %1551 = vmax.xlane.f32.xlu0 %v1550_v29 }
 0x275   :  { %v6286_v31 = vpop.f32.mrb[23].mxu1  ;;  %v1577_v38 = vsel %vm1534_vm3, %v7171_v30, -inf }
 0x277   :  { %3023 = vrot.lane.b32.xlu1 %v6878_v51, %s6742_s10 }
 0x278   :  { %1557 = vmax.xlane.f32.xlu0 %v1556_v32 }
 0x27b   :  { %3181 = vrot.lane.b32.xlu1 %v6891_v55, %s6741_s9 }
 0x28e   :  { %2947 = vrot.lane.b32.xlu0 %v6861_v46, %s6741_s9 }
 0x292   :  { %2945 = vrot.lane.b32.xlu0 %v6861_v46, %s6742_s10 }
 0x296   :  { %3103 = vrot.lane.b32.xlu0 %v6872_v50, %s6741_s9 }
 0x29f   :  { %1560 = vmax.xlane.f32.xlu1 %v1559_v33 }
 0x2a3   :  { %1566 = vmax.xlane.f32.xlu1 %v1565_v34 }
 0x2a7   :  { %1572 = vmax.xlane.f32.xlu1 %v1571_v37 }
 0x2ab   :  { %1578 = vmax.xlane.f32.xlu1 %v1577_v38 }
 0x2d7   :  { %v1537_v9 = vpop.xlane.xlu0 %1536 }
 0x2d8   :  { %v1583_v16 = vsub.f32 %v7117_v35, %v1537_v9 }
 0x2da   :  { %v1599_v18 = vmul.f32 1.442695, %v1583_v16 }
 0x2db   :  { %v1540_v19 = vpop.xlane.xlu1 %1539 }
 0x2dc   :  { %6584 = vpow2.f32 %v1599_v18  ;;  %v1584_v21 = vsub.f32 %v7121_v39, %v1540_v19 }
 0x2de   :  { %v1601_v22 = vmul.f32 1.442695, %v1584_v21 }
 0x2e0   :  { %6586 = vpow2.f32 %v1601_v22 }
 0x2e6   :  { %v7223_v24 = vpop.eup %6584 }
 0x2e7   :  { %v1631_v25 = vsel %vm1534_vm3, %v7223_v24, 0.0  ;;  %v1549_v27 = vpop.xlane.xlu1 %1548 }
 0x2e8   :  { %1632 = vadd.xlane.f32.xlu1 %v1631_v25  ;;  %v1587_v33 = vsub.f32 %v7129_v47, %v1549_v27 }
 0x2e9   :  { %v1564_v29 = vpop.xlane.xlu0 %1563 }
 0x2ea   :  { %v7227_v31 = vpop.eup %6586  ;;  %v1592_v32 = vsub.f32 %v7133_v52, %v1564_v29  ;;  %v1607_v9 = vmul.f32 1.442695, %v1587_v33 }
 0x2eb   :  { %v1634_v35 = vsel %vm1534_vm3, %v7227_v31, 0.0 }
 0x2ec   :  { %v1617_v39 = vmul.f32 1.442695, %v1592_v32  ;;  %1635 = vadd.xlane.f32.xlu0 %v1634_v35 }
 0x2ed   :  { %v1543_v34 = vpop.xlane.xlu0 %1542 }
 0x2ee   :  { %6588 = vpow2.f32 %v1617_v39  ;;  %v1585_v37 = vsub.f32 %v7125_v42, %v1543_v34 }
 0x2ef   :  { %v1555_v38 = vpop.xlane.xlu1 %1554 }
 0x2f0   :  { %v1603_v16 = vmul.f32 1.442695, %v1585_v37  ;;  %v1589_v18 = vsub.f32 %v7143_v1, %v1555_v38 }
 0x2f1   :  { %v1570_v19 = vpop.xlane.xlu0 %1569 }
 0x2f2   :  { %6590 = vpow2.f32 %v1603_v16  ;;  %v1594_v52 = vsub.f32 %v7139_v60, %v1570_v19  ;;  %v1611_v21 = vmul.f32 1.442695, %v1589_v18 }
 0x2f3   :  { %6592 = vpow2.f32 %v1607_v9 }
 0x2f4   :  { %v1621_v22 = vmul.f32 1.442695, %v1594_v52 }
 0x2f5   :  { %v1546_v25 = vpop.xlane.xlu0 %1545 }
 0x2f6   :  { %6594 = vpow2.f32 %v1621_v22  ;;  %v1586_v47 = vsub.f32 %v7127_v44, %v1546_v25 }
 0x2f7   :  { %6596 = vpow2.f32 %v1611_v21 }
 0x2f8   :  { %v7237_v27 = vpop.eup %6588  ;;  %v1605_v42 = vmul.f32 1.442695, %v1586_v47 }
 0x2f9   :  { %v1576_v29 = vpop.xlane.xlu0 %1575  ;;  %v1658_v32 = vsel %vm1534_vm3, %v7237_v27, 0.0 }
 0x2fa   :  { %6598 = vpow2.f32 %v1605_v42  ;;  %v1596_v1 = vsub.f32 %v7147_v6, %v1576_v29  ;;  %1659 = vadd.xlane.f32.xlu0 %v1658_v32 }
 0x2fc   :  { %v7242_v60 = vpop.eup %6590  ;;  %v1625_v35 = vmul.f32 1.442695, %v1596_v1 }
 0x2fd   :  { %v1582_v33 = vpop.xlane.xlu0 %1581  ;;  %v1637_v39 = vsel %vm1534_vm3, %v7242_v60, 0.0  ;;  %v7246_v44 = vpop.eup %6592 }
 0x2fe   :  { %6600 = vpow2.f32 %v1625_v35  ;;  %v1598_v34 = vsub.f32 %v7153_v17, %v1582_v33  ;;  %1638 = vadd.xlane.f32.xlu1 %v1637_v39  ;;  %v1643_v16 = vsel %vm1534_vm3, %v7246_v44, 0.0 }
 0x300   :  { %v7249_v37 = vpop.eup %6594  ;;  %v1629_v38 = vmul.f32 1.442695, %v1598_v34  ;;  %v7285_v34 = vpop.permute.xlu1 %3025 }
 0x301   :  { %v1552_v9 = vpop.xlane.xlu0 %1551  ;;  %v1664_v6 = vsel %vm1534_vm3, %v7249_v37, 0.0  ;;  %v7255_v18 = vpop.eup %6596 }
 0x302   :  { %6602 = vpow2.f32 %v1629_v38  ;;  %v1588_v19 = vsub.f32 %v7137_v57, %v1552_v9  ;;  %1665 = vadd.xlane.f32.xlu0 %v1664_v6  ;;  %1644 = vadd.xlane.f32.xlu1 %v1643_v16  ;;  %v1649_v25 = vsel %vm1534_vm3, %v7255_v18, 0.0 }
 0x304   :  { %v7258_v52 = vpop.eup %6598  ;;  %v1609_v17 = vmul.f32 1.442695, %v1588_v19  ;;  %v7291_v38 = vpop.permute.xlu1 %3023 }
 0x305   :  { %v1558_v21 = vpop.xlane.xlu0 %1557  ;;  %v1640_v22 = vsel %vm1534_vm3, %v7258_v52, 0.0 }
 0x306   :  { %6604 = vpow2.f32 %v1609_v17  ;;  %v1590_v47 = vsub.f32 %v7151_v12, %v1558_v21  ;;  %1641 = vadd.xlane.f32.xlu0 %v1640_v22  ;;  %1650 = vadd.xlane.f32.xlu1 %v1649_v25 }
 0x308   :  { %v7265_v42 = vpop.eup %6600  ;;  %v1613_v57 = vmul.f32 1.442695, %v1590_v47  ;;  %v7295_v9 = vpop.permute.xlu1 %3181 }
 0x309   :  { %v1670_v29 = vsel %vm1534_vm3, %v7265_v42, 0.0 }
 0x30a   :  { %6606 = vpow2.f32 %v1613_v57  ;;  %1671 = vadd.xlane.f32.xlu0 %v1670_v29 }
 0x30c   :  { %v7269_v32 = vpop.eup %6602 }
 0x30d   :  { %v1676_v1 = vsel %vm1534_vm3, %v7269_v32, 0.0 }
 0x30e   :  { %1677 = vadd.xlane.f32.xlu0 %v1676_v1 }
 0x310   :  { %v7273_v35 = vpop.eup %6604 }
 0x311   :  { %v1646_v12 = vsel %vm1534_vm3, %v7273_v35, 0.0 }
 0x312   :  { %1647 = vadd.xlane.f32.xlu0 %v1646_v12 }
 0x314   :  { %v7277_v33 = vpop.eup %6606 }
 0x315   :  { %v1652_v39 = vsel %vm1534_vm3, %v7277_v33, 0.0 }
 0x316   :  { %1653 = vadd.xlane.f32.xlu0 %v1652_v39  ;;  %v7346_v39 = vpop.permute.xlu0 %2947 }
 0x317   :  { %3179 = vrot.lane.b32.xlu1 %v6891_v55, %s6742_s10 }
 0x31b   :  { %3337 = vrot.lane.b32.xlu1 %v6910_v59, %s6741_s9 }
 0x31f   :  { %3335 = vrot.lane.b32.xlu1 %v6910_v59, %s6742_s10 }
 0x323   :  { %3493 = vrot.lane.b32.xlu1 %v6926_v63, %s6741_s9 }
 0x327   :  { %3491 = vrot.lane.b32.xlu1 %v6926_v63, %s6742_s10 }
 0x32c   :  { %3101 = vrot.lane.b32.xlu0 %v6872_v50, %s6742_s10  ;;  %v1561_v6 = vpop.xlane.xlu1 %1560 }
 0x32d   :  { %v1591_v19 = vsub.f32 %v7157_v20, %v1561_v6 }
 0x32f   :  { %v1615_v17 = vmul.f32 1.442695, %v1591_v19 }
 0x330   :  { %3259 = vrot.lane.b32.xlu0 %v6897_v56, %s6741_s9  ;;  %v1567_v16 = vpop.xlane.xlu1 %1566 }
 0x331   :  { %v1593_v21 = vsub.f32 %v7161_v23, %v1567_v16  ;;  %6608 = vpow2.f32 %v1615_v17  ;;  %v7350_v16 = vpop.permute.xlu0 %2945 }
 0x333   :  { %v1619_v25 = vmul.f32 1.442695, %v1593_v21 }
 0x334   :  { %3257 = vrot.lane.b32.xlu0 %v6897_v56, %s6742_s10  ;;  %v1573_v22 = vpop.xlane.xlu1 %1572 }
 0x335   :  { %v1595_v47 = vsub.f32 %v7165_v26, %v1573_v22  ;;  %6610 = vpow2.f32 %v1619_v25 }
 0x337   :  { %v1623_v57 = vmul.f32 1.442695, %v1595_v47 }
 0x338   :  { %3415 = vrot.lane.b32.xlu0 %v6916_v61, %s6741_s9  ;;  %v1579_v6 = vpop.xlane.xlu1 %1578 }
 0x339   :  { %6612 = vpow2.f32 %v1623_v57  ;;  %v1597_v19 = vsub.f32 %v7171_v30, %v1579_v6 }
 0x33b   :  { %v7314_v20 = vpop.eup %6608  ;;  %v1627_v17 = vmul.f32 1.442695, %v1597_v19 }
 0x33c   :  { %3413 = vrot.lane.b32.xlu0 %v6916_v61, %s6742_s10  ;;  %v1655_v23 = vsel %vm1534_vm3, %v7314_v20, 0.0 }
 0x33f   :  { %v7320_v29 = vpop.eup %6610 }
 0x340   :  { %3571 = vrot.lane.b32.xlu0 %v6933_v2, %s6741_s9  ;;  %v1661_v26 = vsel %vm1534_vm3, %v7320_v29, 0.0 }
 0x343   :  { %v7326_v1 = vpop.eup %6612 }
 0x344   :  { %3569 = vrot.lane.b32.xlu0 %v6933_v2, %s6742_s10  ;;  %v1667_v12 = vsel %vm1534_vm3, %v7326_v1, 0.0 }
 0x348   :  { %3727 = vrot.lane.b32.xlu0 %v6954_v7, %s6741_s9 }
 0x34b   :  { %1656 = vadd.xlane.f32.xlu1 %v1655_v23 }
 0x34c   :  { %3725 = vrot.lane.b32.xlu0 %v6954_v7, %s6742_s10 }
 0x34f   :  { %1662 = vadd.xlane.f32.xlu1 %v1661_v26 }
 0x350   :  { %3883 = vrot.lane.b32.xlu0 %v6973_v11, %s6741_s9 }
 0x353   :  { %1668 = vadd.xlane.f32.xlu1 %v1667_v12 }
 0x354   :  { %3881 = vrot.lane.b32.xlu0 %v6973_v11, %s6742_s10 }
 0x358   :  { %4039 = vrot.lane.b32.xlu0 %v6989_v14, %s6741_s9 }
 0x35c   :  { %4037 = vrot.lane.b32.xlu0 %v6989_v14, %s6742_s10 }
 0x360   :  { %4446 = vrot.lane.b32.xlu0 %v6878_v51, %s6743_s11  ;;  %v7353_v51 = vpop.permute.xlu0 %3103 }
 0x364   :  { %4600 = vrot.lane.b32.xlu0 %v6891_v55, %s6743_s11  ;;  %3649 = vrot.lane.b32.xlu1 %v6939_v3, %s6741_s9 }
 0x368   :  { %4831 = vrot.lane.b32.xlu0 %v6916_v61, %s6743_s11 }
 0x36c   :  { %4985 = vrot.lane.b32.xlu0 %v6933_v2, %s6743_s11 }
 0x375   :  { %v1633_v55 = vpop.xlane.xlu1 %1632 }
 0x376   :  { %6614 = vrcp.f32 %v1633_v55 }
 0x377   :  { %6616 = vpow2.f32 %v1627_v17 }
 0x379   :  { %v1636_v21 = vpop.xlane.xlu0 %1635 }
 0x37a   :  { %6618 = vrcp.f32 %v1636_v21 }
 0x380   :  { %v6615_v22 = vpop.eup %6614 }
 0x381   :  { %v1695_v61 = vmul.f32 %v6615_v22, %v7223_v24  ;;  %v7356_v25 = vpop.eup %6616 }
 0x382   :  { %v1673_v24 = vsel %vm1534_vm3, %v7356_v25, 0.0 }
 0x383   :  { %6295 = vmatmul.mubr.msk.f32.vlgmr.msra.gmra.mrb[24].mxu1 %vm1713_vm4, %v1695_v61 }
 0x384   :  { %v6619_v2 = vpop.eup %6618  ;;  %6303 = vmatpush3.msk.msra.mxu1 %vm1717_vm2, %v7193_v40  ;;  %6304 = vmatprep.mubr.msk.f32.mxu1 %vm6738_vm0, %v6736_v28 }
 0x385   :  { %v1696_v30 = vmul.f32 %v6619_v2, %v7227_v31  ;;  %6312 = vmatprep.subr.mxu1 %v6736_v28 }
 0x387   :  { %6300 = vmatmul.mubr.msk.f32.vlgmr.msra.gmra.mrb[12].mxu0 %vm1713_vm4, %v1696_v30  ;;  %v1660_v40 = vpop.xlane.xlu0 %1659 }
 0x388   :  { %6308 = vmatpush3.msk.msra.mxu0 %vm1717_vm2, %v7197_v43  ;;  %1674 = vadd.xlane.f32.xlu1 %v1673_v24 }
 0x389   :  { %6309 = vmatprep.mubr.msk.f32.mxu0 %vm6738_vm0, %v6736_v28  ;;  %6317 = vmatprep.subr.mxu0 %v6736_v28 }
 0x38b   :  { %v1639_v47 = vpop.xlane.xlu1 %1638 }
 0x38c   :  { %6620 = vrcp.f32 %v1639_v47 }
 0x38f   :  { %v1666_v31 = vpop.xlane.xlu0 %1665  ;;  %v1645_v57 = vpop.xlane.xlu1 %1644 }
 0x390   :  { %6622 = vrcp.f32 %v1645_v57 }
 0x393   :  { %v1642_v23 = vpop.xlane.xlu0 %1641  ;;  %v1651_v26 = vpop.xlane.xlu1 %1650 }
 0x394   :  { %6624 = vrcp.f32 %v1642_v23 }
 0x395   :  { %6626 = vrcp.f32 %v1651_v26 }
 0x396   :  { %v6621_v12 = vpop.eup %6620 }
 0x397   :  { %v1672_v6 = vpop.xlane.xlu0 %1671  ;;  %v1697_v43 = vmul.f32 %v6621_v12, %v7242_v60 }
 0x399   :  { %3647 = vrot.lane.b32.xlu1 %v6939_v3, %s6742_s10  ;;  %6305 = vmatmul.mubr.msk.f32.vlgmr.msra.gmra.mrb[26].mxu1 %vm1713_vm4, %v1697_v43 }
 0x39a   :  { %6313 = vmatpush3.msk.msra.mxu1 %vm1717_vm2, %v7195_v41  ;;  %6314 = vmatprep.mubr.msk.f32.mxu1 %vm6738_vm0, %v6736_v28  ;;  %v6623_v19 = vpop.eup %6622 }
 0x39b   :  { %v1678_v17 = vpop.xlane.xlu0 %1677  ;;  %6322 = vmatprep.subr.mxu1 %v6736_v28  ;;  %v1699_v55 = vmul.f32 %v6623_v19, %v7246_v44 }
 0x39d   :  { %3805 = vrot.lane.b32.xlu1 %v6967_v10, %s6741_s9  ;;  %6315 = vmatmul.mubr.msk.f32.vlgmr.msra.gmra.mrb[28].mxu1 %vm1713_vm4, %v1699_v55 }
 0x39e   :  { %v6625_v60 = vpop.eup %6624  ;;  %6323 = vmatpush3.msk.msra.mxu1 %vm1717_vm2, %v7201_v48  ;;  %6324 = vmatprep.mubr.msk.f32.mxu1 %vm6738_vm0, %v6736_v28 }
 0x39f   :  { %v6627_v21 = vpop.eup %6626  ;;  %v1648_v41 = vpop.xlane.xlu0 %1647  ;;  %v1698_v22 = vmul.f32 %v6625_v60, %v7258_v52  ;;  %6332 = vmatprep.subr.mxu1 %v6736_v28 }
 0x3a0   :  { %6628 = vrcp.f32 %v1648_v41  ;;  %v1701_v44 = vmul.f32 %v6627_v21, %v7255_v18 }
 0x3a1   :  { %6310 = vmatmul.mubr.msk.f32.vlgmr.msra.gmra.mrb[14].mxu0 %vm1713_vm4, %v1698_v22  ;;  %3803 = vrot.lane.b32.xlu1 %v6967_v10, %s6742_s10 }
 0x3a2   :  { %6318 = vmatpush3.msk.msra.mxu0 %vm1717_vm2, %v7199_v45  ;;  %6325 = vmatmul.mubr.msk.f32.vlgmr.msra.gmra.mrb[30].mxu1 %vm1713_vm4, %v1701_v44 }
 0x3a3   :  { %6333 = vmatpush3.msk.msra.mxu1 %vm1717_vm2, %v7205_v53  ;;  %v1654_v48 = vpop.xlane.xlu0 %1653  ;;  %6319 = vmatprep.mubr.msk.f32.mxu0 %vm6738_vm0, %v6736_v28 }
 0x3a4   :  { %6630 = vrcp.f32 %v1654_v48  ;;  %6327 = vmatprep.subr.mxu0 %v6736_v28  ;;  %6334 = vmatprep.mubr.msk.f32.mxu1 %vm6738_vm0, %v6736_v28 }
 0x3a5   :  { %3961 = vrot.lane.b32.xlu1 %v6983_v13, %s6741_s9  ;;  %6342 = vmatprep.subr.mxu1 %v6736_v28  ;;  %6632 = vrcp.f32 %v1660_v40 }
 0x3a6   :  { %6634 = vrcp.f32 %v1666_v31 }
 0x3a7   :  { %6636 = vrcp.f32 %v1672_v6 }
 0x3a8   :  { %6638 = vrcp.f32 %v1678_v17 }
 0x3a9   :  { %3959 = vrot.lane.b32.xlu1 %v6983_v13, %s6742_s10 }
 0x3aa   :  { %v6629_v45 = vpop.eup %6628 }
 0x3ab   :  { %v1700_v53 = vmul.f32 %v6629_v45, %v7273_v35 }
 0x3ad   :  { %6320 = vmatmul.mubr.msk.f32.vlgmr.msra.gmra.mrb[16].mxu0 %vm1713_vm4, %v1700_v53  ;;  %4117 = vrot.lane.b32.xlu1 %v6995_v15, %s6741_s9 }
 0x3ae   :  { %v6631_v18 = vpop.eup %6630  ;;  %6328 = vmatpush3.msk.msra.mxu0 %vm1717_vm2, %v7203_v49  ;;  %6329 = vmatprep.mubr.msk.f32.mxu0 %vm6738_vm0, %v6736_v28 }
 0x3af   :  { %v1702_v52 = vmul.f32 %v6631_v18, %v7277_v33  ;;  %6337 = vmatprep.subr.mxu0 %v6736_v28  ;;  %v6633_v61 = vpop.eup %6632 }
 0x3b0   :  { %v1704_v49 = vmul.f32 %v6633_v61, %v7237_v27  ;;  %v6635_v35 = vpop.eup %6634 }
 0x3b1   :  { %6330 = vmatmul.mubr.msk.f32.vlgmr.msra.gmra.mrb[18].mxu0 %vm1713_vm4, %v1702_v52  ;;  %4115 = vrot.lane.b32.xlu1 %v6995_v15, %s6742_s10  ;;  %v6637_v33 = vpop.eup %6636 }
 0x3b2   :  { %6338 = vmatpush3.msk.msra.mxu0 %vm1717_vm2, %v7207_v54  ;;  %6339 = vmatprep.mubr.msk.f32.mxu0 %vm6738_vm0, %v6736_v28  ;;  %v1706_v54 = vmul.f32 %v6635_v35, %v7249_v37  ;;  %v6639_v27 = vpop.eup %6638 }
 0x3b3   :  { %6347 = vmatprep.subr.mxu0 %v6736_v28 }
 0x3b5   :  { %6340 = vmatmul.mubr.msk.f32.vlgmr.msra.gmra.mrb[20].mxu0 %vm1713_vm4, %v1704_v49  ;;  %4369 = vrot.lane.b32.xlu1 %v6861_v46, %s6743_s11  ;;  %v1708_v46 = vmul.f32 %v6637_v33, %v7265_v42 }
 0x3b6   :  { %6348 = vmatpush3.msk.msra.mxu0 %vm1717_vm2, %v7219_v8  ;;  %6349 = vmatprep.mubr.msk.f32.mxu0 %vm6738_vm0, %v6736_v28  ;;  %v3180_v8 = vpop.permute.xlu1 %3179 }
 0x3b7   :  { %6357 = vmatprep.subr.mxu0 %v6736_v28 }
 0x3b9   :  { %6350 = vmatmul.mubr.msk.f32.vlgmr.msra.gmra.mrb[22].mxu0 %vm1713_vm4, %v1706_v54  ;;  %4523 = vrot.lane.b32.xlu1 %v6872_v50, %s6743_s11  ;;  %v1710_v50 = vmul.f32 %v6639_v27, %v7269_v32  ;;  %v3102_v32 = vpop.permute.xlu0 %3101 }
 0x3ba   :  { %6358 = vmatpush3.msk.msra.mxu0 %vm1717_vm2, %v7211_v62  ;;  %6359 = vmatprep.mubr.msk.f32.mxu0 %vm6738_vm0, %v6736_v28  ;;  %v3338_v62 = vpop.permute.xlu1 %3337 }
 0x3bb   :  { %6367 = vmatprep.subr.mxu0 %v6736_v28 }
 0x3bd   :  { %6360 = vmatmul.mubr.msk.f32.vlgmr.msra.gmra.mrb[24].mxu0 %vm1713_vm4, %v1708_v46  ;;  %4677 = vrot.lane.b32.xlu1 %v6897_v56, %s6743_s11  ;;  %v3260_v30 = vpop.permute.xlu0 %3259 }
 0x3be   :  { %6368 = vmatpush3.msk.msra.mxu0 %vm1717_vm2, %v7215_v4  ;;  %6369 = vmatprep.mubr.msk.f32.mxu0 %vm6738_vm0, %v6736_v28  ;;  %v3336_v56 = vpop.permute.xlu1 %3335 }
 0x3bf   :  { %6377 = vmatprep.subr.mxu0 %v6736_v28 }
 0x3c1   :  { %6370 = vmatmul.mubr.msk.f32.vlgmr.msra.gmra.mrb[26].mxu0 %vm1713_vm4, %v1710_v50  ;;  %4754 = vrot.lane.b32.xlu1 %v6910_v59, %s6743_s11 }
 0x3c2   :  { %6379 = vmatprep.mubr.msk.f32.mxu0 %vm6738_vm0, %v6736_v28  ;;  %v3494_v59 = vpop.permute.xlu1 %3493 }
 0x3c5   :  { %6378 = vmatpush3.xpose.msk.msra.mxu0 %vm214_vm1, %v7285_v34  ;;  %4908 = vrot.lane.b32.xlu1 %v6926_v63, %s6743_s11 }
 0x3c6   :  { %6387 = vmatprep.subr.mxu0 %v6736_v28  ;;  %v3492_v63 = vpop.permute.xlu1 %3491 }
 0x3c8   :  { %6380 = vmatmul.mubr.msk.f32.vlgmr.msra.gmra.mrb[28].mxu0 %vm214_vm1, %v7291_v38 }
 0x3c9   :  { %6388 = vmatpush3.xpose.msk.msra.mxu0 %vm214_vm1, %v7295_v9  ;;  %5062 = vrot.lane.b32.xlu1 %v6939_v3, %s6743_s11 }
 0x3ca   :  { %6389 = vmatprep.mubr.msk.f32.mxu0 %vm6738_vm0, %v6736_v28  ;;  %6397 = vmatprep.subr.mxu0 %v6736_v28 }
 0x3cc   :  { %6390 = vmatmul.mubr.msk.f32.vlgmr.msra.gmra.mrb[30].mxu0 %vm214_vm1, %v3180_v8 }
 0x3cd   :  { %6398 = vmatpush3.xpose.msk.msra.mxu0 %vm214_vm1, %v3338_v62  ;;  %6399 = vmatprep.mubr.msk.f32.mxu0 %vm6738_vm0, %v6736_v28 }
 0x3ce   :  { %6407 = vmatprep.subr.mxu0 %v6736_v28 }
 0x3d0   :  { %6400 = vmatmul.mubr.msk.f32.vlgmr.msra.gmra.mrb[32].mxu0 %vm214_vm1, %v3336_v56 }
 0x3d1   :  { %6408 = vmatpush3.xpose.msk.msra.mxu0 %vm214_vm1, %v3494_v59  ;;  %6409 = vmatprep.mubr.msk.f32.mxu0 %vm6738_vm0, %v6736_v28 }
 0x3d2   :  { %6417 = vmatprep.subr.mxu0 %v6736_v28 }
 0x3d4   :  { %6410 = vmatmul.mubr.msk.f32.vlgmr.msra.gmra.mrb[34].mxu0 %vm214_vm1, %v3492_v63 }
 0x3d5   :  { %6419 = vmatprep.mubr.msk.f32.mxu0 %vm6738_vm0, %v6736_v28 }
 0x3d8   :  { %v1657_v3 = vpop.xlane.xlu1 %1656 }
 0x3d9   :  { %6640 = vrcp.f32 %v1657_v3 }
 0x3dc   :  { %v1663_v4 = vpop.xlane.xlu1 %1662 }
 0x3dd   :  { %6642 = vrcp.f32 %v1663_v4 }
 0x3e0   :  { %v1669_v37 = vpop.xlane.xlu1 %1668 }
 0x3e1   :  { %6644 = vrcp.f32 %v1669_v37 }
 0x3e3   :  { %v6641_v42 = vpop.eup %6640 }
 0x3e4   :  { %v1703_v34 = vmul.f32 %v6641_v42, %v7314_v20  ;;  %v3650_v38 = vpop.permute.xlu1 %3649 }
 0x3e5   :  { %6418 = vmatpush3.xpose.msk.msra.mxu0 %vm214_vm1, %v3650_v38 }
 0x3e6   :  { %6335 = vmatmul.mubr.msk.f32.vlgmr.msra.gmra.mrb[32].mxu1 %vm1713_vm4, %v1703_v34  ;;  %6427 = vmatprep.subr.mxu0 %v6736_v28 }
 0x3e7   :  { %v6643_v9 = vpop.eup %6642  ;;  %6343 = vmatpush3.msk.msra.mxu1 %vm1717_vm2, %v7209_v58  ;;  %6344 = vmatprep.mubr.msk.f32.mxu1 %vm6738_vm0, %v6736_v28  ;;  %v3258_v58 = vpop.permute.xlu0 %3257 }
 0x3e8   :  { %v1705_v2 = vmul.f32 %v6643_v9, %v7320_v29  ;;  %6352 = vmatprep.subr.mxu1 %v6736_v28 }
 0x3ea   :  { %6345 = vmatmul.mubr.msk.f32.vlgmr.msra.gmra.mrb[34].mxu1 %vm1713_vm4, %v1705_v2 }
 0x3eb   :  { %v6645_v20 = vpop.eup %6644  ;;  %6353 = vmatpush3.msk.msra.mxu1 %vm1717_vm2, %v7213_v0  ;;  %6354 = vmatprep.mubr.msk.f32.mxu1 %vm6738_vm0, %v6736_v28  ;;  %v3416_v29 = vpop.permute.xlu0 %3415 }
 0x3ec   :  { %v1707_v24 = vmul.f32 %v6645_v20, %v7326_v1  ;;  %6362 = vmatprep.subr.mxu1 %v6736_v28 }
 0x3ee   :  { %6355 = vmatmul.mubr.msk.f32.vlgmr.msra.gmra.mrb[36].mxu1 %vm1713_vm4, %v1707_v24 }
 0x3ef   :  { %6363 = vmatpush3.msk.msra.mxu1 %vm1717_vm2, %v7217_v5  ;;  %6364 = vmatprep.mubr.msk.f32.mxu1 %vm6738_vm0, %v6736_v28  ;;  %v3414_v0 = vpop.permute.xlu0 %3413 }
 0x3f0   :  { %6372 = vmatprep.subr.mxu1 %v6736_v28 }
 0x3f3   :  { %v3572_v40 = vpop.permute.xlu0 %3571 }
 0x3f7   :  { %v3570_v47 = vpop.permute.xlu0 %3569 }
 0x3fb   :  { %v3728_v31 = vpop.permute.xlu0 %3727 }
 0x3ff   :  { %v3726_v57 = vpop.permute.xlu0 %3725 }
 0x403   :  { %v3884_v26 = vpop.permute.xlu0 %3883 }
 0x407   :  { %v3882_v6 = vpop.permute.xlu0 %3881 }
 0x40b   :  { %v4040_v55 = vpop.permute.xlu0 %4039 }
 0x415   :  { %v1675_v1 = vpop.xlane.xlu1 %1674 }
 0x416   :  { %6646 = vrcp.f32 %v1675_v1 }
 0x419   :  { %v3648_v23 = vpop.permute.xlu1 %3647 }
 0x41a   :  { %6420 = vmatmul.mubr.msk.f32.vlgmr.msra.gmra.mrb[36].mxu0 %vm214_vm1, %v3648_v23 }
 0x41b   :  { %6429 = vmatprep.mubr.msk.f32.mxu0 %vm6738_vm0, %v6736_v28 }
 0x41d   :  { %v3806_v5 = vpop.permute.xlu1 %3805 }
 0x41e   :  { %6428 = vmatpush3.xpose.msk.msra.mxu0 %vm214_vm1, %v3806_v5 }
 0x41f   :  { %6437 = vmatprep.subr.mxu0 %v6736_v28 }
 0x420   :  { %v6647_v12 = vpop.eup %6646 }
 0x421   :  { %v1709_v43 = vmul.f32 %v6647_v12, %v7356_v25  ;;  %v3804_v19 = vpop.permute.xlu1 %3803  ;;  %v4038_v25 = vpop.permute.xlu0 %4037 }
 0x422   :  { %6430 = vmatmul.mubr.msk.f32.vlgmr.msra.gmra.mrb[38].mxu0 %vm214_vm1, %v3804_v19 }
 0x423   :  { %6365 = vmatmul.mubr.msk.f32.vlgmr.msra.gmra.mrb[38].mxu1 %vm1713_vm4, %v1709_v43  ;;  %6439 = vmatprep.mubr.msk.f32.mxu0 %vm6738_vm0, %v6736_v28 }
 0x424   :  { %6373 = vmatpush3.xpose.msk.msra.mxu1 %vm214_vm1, %v7346_v39  ;;  %6374 = vmatprep.mubr.msk.f32.mxu1 %vm6738_vm0, %v6736_v28 }
 0x425   :  { %v3962_v17 = vpop.permute.xlu1 %3961  ;;  %6382 = vmatprep.subr.mxu1 %v6736_v28  ;;  %v4447_v60 = vpop.permute.xlu0 %4446 }
 0x426   :  { %6438 = vmatpush3.xpose.msk.msra.mxu0 %vm214_vm1, %v3962_v17 }
 0x427   :  { %6375 = vmatmul.mubr.msk.f32.vlgmr.msra.gmra.mrb[40].mxu1 %vm214_vm1, %v7350_v16  ;;  %6447 = vmatprep.subr.mxu0 %v6736_v28 }
 0x428   :  { %6383 = vmatpush3.xpose.msk.msra.mxu1 %vm214_vm1, %v7353_v51  ;;  %6384 = vmatprep.mubr.msk.f32.mxu1 %vm6738_vm0, %v6736_v28 }
 0x429   :  { %v3960_v39 = vpop.permute.xlu1 %3959  ;;  %6392 = vmatprep.subr.mxu1 %v6736_v28 }
 0x42a   :  { %6440 = vmatmul.mubr.msk.f32.vlgmr.msra.gmra.mrb[40].mxu0 %vm214_vm1, %v3960_v39 }
 0x42b   :  { %6385 = vmatmul.mubr.msk.f32.vlgmr.msra.gmra.mrb[42].mxu1 %vm214_vm1, %v3102_v32  ;;  %6449 = vmatprep.mubr.msk.f32.mxu0 %vm6738_vm0, %v6736_v28 }
 0x42c   :  { %6393 = vmatpush3.xpose.msk.msra.mxu1 %vm214_vm1, %v3260_v30  ;;  %6394 = vmatprep.mubr.msk.f32.mxu1 %vm6738_vm0, %v6736_v28 }
 0x42d   :  { %v4118_v16 = vpop.permute.xlu1 %4117  ;;  %6402 = vmatprep.subr.mxu1 %v6736_v28 }
 0x42e   :  { %6448 = vmatpush3.xpose.msk.msra.mxu0 %vm214_vm1, %v4118_v16 }
 0x42f   :  { %6395 = vmatmul.mubr.msk.f32.vlgmr.msra.gmra.mrb[44].mxu1 %vm214_vm1, %v3258_v58  ;;  %6457 = vmatprep.subr.mxu0 %v6736_v28 }
 0x430   :  { %6403 = vmatpush3.xpose.msk.msra.mxu1 %vm214_vm1, %v3416_v29  ;;  %6404 = vmatprep.mubr.msk.f32.mxu1 %vm6738_vm0, %v6736_v28 }
 0x431   :  { %v4116_v51 = vpop.permute.xlu1 %4115  ;;  %6412 = vmatprep.subr.mxu1 %v6736_v28 }
 0x432   :  { %6450 = vmatmul.mubr.msk.f32.vlgmr.msra.gmra.mrb[42].mxu0 %vm214_vm1, %v4116_v51 }
 0x433   :  { %6458 = vmatpush3.msk.msra.mxu0 %vm1717_vm2, %v4447_v60  ;;  %6405 = vmatmul.mubr.msk.f32.vlgmr.msra.gmra.mrb[46].mxu1 %vm214_vm1, %v3414_v0 }
 0x434   :  { %6413 = vmatpush3.xpose.msk.msra.mxu1 %vm214_vm1, %v3572_v40  ;;  %6414 = vmatprep.mubr.msk.f32.mxu1 %vm6738_vm0, %v6736_v28 }
 0x435   :  { %6422 = vmatprep.subr.mxu1 %v6736_v28  ;;  %6459 = vmatprep.mubr.msk.f32.mxu0 %vm6738_vm0, %v6736_v28  ;;  %v4370_v21 = vpop.permute.xlu1 %4369 }
 0x436   :  { %6467 = vmatprep.subr.mxu0 %v6736_v28 }
 0x437   :  { %6415 = vmatmul.mubr.msk.f32.vlgmr.msra.gmra.mrb[48].mxu1 %vm214_vm1, %v3570_v47 }
 0x438   :  { %6423 = vmatpush3.xpose.msk.msra.mxu1 %vm214_vm1, %v3728_v31  ;;  %6424 = vmatprep.mubr.msk.f32.mxu1 %vm6738_vm0, %v6736_v28 }
 0x439   :  { %6432 = vmatprep.subr.mxu1 %v6736_v28 }
 0x43b   :  { %6425 = vmatmul.mubr.msk.f32.vlgmr.msra.gmra.mrb[50].mxu1 %vm214_vm1, %v3726_v57 }
 0x43c   :  { %6433 = vmatpush3.xpose.msk.msra.mxu1 %vm214_vm1, %v3884_v26  ;;  %6434 = vmatprep.mubr.msk.f32.mxu1 %vm6738_vm0, %v6736_v28 }
 0x43d   :  { %6442 = vmatprep.subr.mxu1 %v6736_v28 }
 0x43f   :  { %6435 = vmatmul.mubr.msk.f32.vlgmr.msra.gmra.mrb[52].mxu1 %vm214_vm1, %v3882_v6 }
 0x440   :  { %6443 = vmatpush3.xpose.msk.msra.mxu1 %vm214_vm1, %v4040_v55  ;;  %6444 = vmatprep.mubr.msk.f32.mxu1 %vm6738_vm0, %v6736_v28 }
 0x441   :  { %6452 = vmatprep.subr.mxu1 %v6736_v28 }
 0x443   :  { %6445 = vmatmul.mubr.msk.f32.vlgmr.msra.gmra.mrb[54].mxu1 %vm214_vm1, %v4038_v25 }
 0x444   :  { %6453 = vmatpush3.msk.msra.mxu1 %vm1717_vm2, %v4370_v21  ;;  %6454 = vmatprep.mubr.msk.f32.mxu1 %vm6738_vm0, %v6736_v28 }
 0x445   :  { %6462 = vmatprep.subr.mxu1 %v6736_v28 }
 0x456   :  { %v7581_v41 = vpop.f32.mrb[24].mxu1 }
 0x457   :  { %v6296_v22 = vpop.f32.mrb[25].mxu1 }
 0x45a   :  { %v7583_v44 = vpop.f32.mrb[12].mxu0 }
 0x45b   :  { %v6301_v48 = vpop.f32.mrb[13].mxu0 }
 0x46c   :  { %v7585_v45 = vpop.f32.mrb[26].mxu1 }
 0x46d   :  { %v6306_v53 = vpop.f32.mrb[27].mxu1 }
 0x470   :  { %v7587_v18 = vpop.f32.mrb[28].mxu1 }
 0x471   :  { %v6316_v52 = vpop.f32.mrb[29].mxu1 }
 0x474   :  { %v7589_v61 = vpop.f32.mrb[14].mxu0 }
 0x475   :  { %v7591_v49 = vpop.f32.mrb[30].mxu1  ;;  %v6311_v35 = vpop.f32.mrb[15].mxu0 }
 0x476   :  { %v6326_v54 = vpop.f32.mrb[31].mxu1 }
 0x480   :  { %v7593_v33 = vpop.f32.mrb[16].mxu0 }
 0x481   :  { %v6321_v46 = vpop.f32.mrb[17].mxu0 }
 0x484   :  { %v7595_v8 = vpop.f32.mrb[18].mxu0 }
 0x485   :  { %v6331_v27 = vpop.f32.mrb[19].mxu0 }
 0x488   :  { %v7597_v50 = vpop.f32.mrb[20].mxu0 }
 0x489   :  { %v6341_v62 = vpop.f32.mrb[21].mxu0 }
 0x48c   :  { %v7599_v56 = vpop.f32.mrb[22].mxu0 }
 0x48d   :  { %v6351_v59 = vpop.f32.mrb[23].mxu0 }
 0x490   :  { %v7601_v63 = vpop.f32.mrb[24].mxu0 }
 0x491   :  { %v6361_v3 = vpop.f32.mrb[25].mxu0 }
 0x494   :  { %v7603_v4 = vpop.f32.mrb[26].mxu0 }
 0x495   :  { %v6371_v37 = vpop.f32.mrb[27].mxu0 }
 0x49b   :  { %v7605_v42 = vpop.f32.mrb[28].mxu0 }
 0x49c   :  { %v6381_v32 = vpop.f32.mrb[29].mxu0  ;;  %v4196_v34 = vsel %vm1534_vm3, %v7605_v42, -inf }
 0x49d   :  { %4197 = vmax.xlane.f32.xlu1 %v4196_v34 }
 0x49f   :  { %v7609_v38 = vpop.f32.mrb[30].mxu0 }
 0x4a0   :  { %v6391_v9 = vpop.f32.mrb[31].mxu0  ;;  %v4202_v21 = vsel %vm1534_vm3, %v7609_v38, -inf }
 0x4a3   :  { %v7611_v2 = vpop.f32.mrb[32].mxu0 }
 0x4a4   :  { %v6401_v30 = vpop.f32.mrb[33].mxu0  ;;  %v4208_v54 = vsel %vm1534_vm3, %v7611_v2, -inf }
 0x4a7   :  { %v7613_v20 = vpop.f32.mrb[34].mxu0 }
 0x4a8   :  { %v6411_v24 = vpop.f32.mrb[35].mxu0  ;;  %v4214_v59 = vsel %vm1534_vm3, %v7613_v20, -inf }
 0x4b9   :  { %v7615_v58 = vpop.f32.mrb[32].mxu1 }
 0x4ba   :  { %v6336_v29 = vpop.f32.mrb[33].mxu1 }
 0x4bd   :  { %v7617_v0 = vpop.f32.mrb[34].mxu1 }
 0x4be   :  { %v6346_v40 = vpop.f32.mrb[35].mxu1 }
 0x4c1   :  { %v7619_v47 = vpop.f32.mrb[36].mxu1 }
 0x4c2   :  { %v6356_v31 = vpop.f32.mrb[37].mxu1 }
 0x4ed   :  { %v7621_v57 = vpop.f32.mrb[36].mxu0 }
 0x4ee   :  { %v6421_v1 = vpop.f32.mrb[37].mxu0  ;;  %v4220_v9 = vsel %vm1534_vm3, %v7621_v57, -inf }
 0x4f5   :  { %v7623_v23 = vpop.f32.mrb[38].mxu0 }
 0x4f6   :  { %v7625_v26 = vpop.f32.mrb[38].mxu1  ;;  %v6431_v5 = vpop.f32.mrb[39].mxu0  ;;  %v4226_v40 = vsel %vm1534_vm3, %v7623_v23, -inf }
 0x4f7   :  { %v6366_v12 = vpop.f32.mrb[39].mxu1 }
 0x4fa   :  { %v7627_v6 = vpop.f32.mrb[40].mxu1 }
 0x4fb   :  { %v6376_v43 = vpop.f32.mrb[41].mxu1  ;;  %v4193_v19 = vsel %vm1534_vm3, %v7627_v6, -inf }
 0x4fc   :  { %4194 = vmax.xlane.f32.xlu0 %v4193_v19  ;;  %v7677_v19 = vpop.permute.xlu1 %4523 }
 0x4fd   :  { %v7631_v17 = vpop.f32.mrb[40].mxu0 }
 0x4fe   :  { %v7633_v55 = vpop.f32.mrb[42].mxu1  ;;  %v6441_v39 = vpop.f32.mrb[41].mxu0  ;;  %v4232_v12 = vsel %vm1534_vm3, %v7631_v17, -inf }
 0x4ff   :  { %v6386_v25 = vpop.f32.mrb[43].mxu1  ;;  %v4199_v16 = vsel %vm1534_vm3, %v7633_v55, -inf }
 0x500   :  { %4200 = vmax.xlane.f32.xlu0 %v4199_v16  ;;  %v7679_v39 = vpop.permute.xlu1 %4677 }
 0x502   :  { %v7637_v51 = vpop.f32.mrb[44].mxu1 }
 0x503   :  { %v6396_v60 = vpop.f32.mrb[45].mxu1  ;;  %v4205_v22 = vsel %vm1534_vm3, %v7637_v51, -inf }
 0x504   :  { %4203 = vmax.xlane.f32.xlu0 %v4202_v21  ;;  %4206 = vmax.xlane.f32.xlu1 %v4205_v22  ;;  %v7683_v25 = vpop.permute.xlu1 %4754 }
 0x505   :  { %v7643_v48 = vpop.f32.mrb[42].mxu0 }
 0x506   :  { %v7645_v53 = vpop.f32.mrb[46].mxu1  ;;  %v6451_v52 = vpop.f32.mrb[43].mxu0  ;;  %v4238_v43 = vsel %vm1534_vm3, %v7643_v48, -inf }
 0x507   :  { %v6406_v35 = vpop.f32.mrb[47].mxu1  ;;  %v4211_v46 = vsel %vm1534_vm3, %v7645_v53, -inf }
 0x508   :  { %4209 = vmax.xlane.f32.xlu0 %v4208_v54  ;;  %4212 = vmax.xlane.f32.xlu1 %v4211_v46  ;;  %v7687_v16 = vpop.permute.xlu1 %4908  ;;  %v7700_v35 = vpop.permute.xlu0 %4600 }
 0x50a   :  { %v7651_v27 = vpop.f32.mrb[48].mxu1 }
 0x50b   :  { %v6416_v62 = vpop.f32.mrb[49].mxu1  ;;  %v4217_v3 = vsel %vm1534_vm3, %v7651_v27, -inf }
 0x50c   :  { %4215 = vmax.xlane.f32.xlu0 %v4214_v59  ;;  %4218 = vmax.xlane.f32.xlu1 %v4217_v3  ;;  %v7693_v60 = vpop.permute.xlu1 %5062  ;;  %v7702_v54 = vpop.permute.xlu0 %4831 }
 0x50e   :  { %v7657_v37 = vpop.f32.mrb[50].mxu1 }
 0x50f   :  { %v6426_v32 = vpop.f32.mrb[51].mxu1  ;;  %v4223_v34 = vsel %vm1534_vm3, %v7657_v37, -inf }
 0x510   :  { %4224 = vmax.xlane.f32.xlu1 %v4223_v34  ;;  %4221 = vmax.xlane.f32.xlu0 %v4220_v9 }
 0x512   :  { %v7663_v30 = vpop.f32.mrb[52].mxu1 }
 0x513   :  { %v6436_v24 = vpop.f32.mrb[53].mxu1  ;;  %v4229_v29 = vsel %vm1534_vm3, %v7663_v30, -inf }
 0x514   :  { %4230 = vmax.xlane.f32.xlu1 %v4229_v29  ;;  %4227 = vmax.xlane.f32.xlu0 %v4226_v40 }
 0x516   :  { %v7669_v31 = vpop.f32.mrb[54].mxu1 }
 0x517   :  { %v6446_v1 = vpop.f32.mrb[55].mxu1  ;;  %v4235_v5 = vsel %vm1534_vm3, %v7669_v31, -inf }
 0x518   :  { %4236 = vmax.xlane.f32.xlu1 %v4235_v5  ;;  %4233 = vmax.xlane.f32.xlu0 %v4232_v12 }
 0x51c   :  { %4239 = vmax.xlane.f32.xlu0 %v4238_v43 }
 0x529   :  { %5216 = vrot.lane.b32.xlu1 %v6967_v10, %s6743_s11 }
 0x52a   :  { %v4198_v21 = vpop.xlane.xlu1 %4197 }
 0x52b   :  { %v4242_v22 = vsub.f32 %v7605_v42, %v4198_v21 }
 0x52d   :  { %5370 = vrot.lane.b32.xlu1 %v6983_v13, %s6743_s11  ;;  %v4259_v52 = vmul.f32 1.442695, %v4242_v22 }
 0x52f   :  { %6648 = vpow2.f32 %v4259_v52 }
 0x532   :  { %5139 = vrot.lane.b32.xlu0 %v6954_v7, %s6743_s11  ;;  %v7704_v7 = vpop.permute.xlu0 %4985 }
 0x536   :  { %5293 = vrot.lane.b32.xlu0 %v6973_v11, %s6743_s11 }
 0x539   :  { %v7696_v10 = vpop.eup %6648 }
 0x53a   :  { %v4292_v13 = vsel %vm1534_vm3, %v7696_v10, 0.0 }
 0x555   :  { %4293 = vadd.xlane.f32.xlu0 %v4292_v13 }
 0x589   :  { %v4195_v11 = vpop.xlane.xlu0 %4194 }
 0x58a   :  { %v4241_v46 = vsub.f32 %v7627_v6, %v4195_v11 }
 0x58c   :  { %v4257_v62 = vmul.f32 1.442695, %v4241_v46 }
 0x58d   :  { %v4201_v59 = vpop.xlane.xlu0 %4200 }
 0x58e   :  { %6650 = vpow2.f32 %v4257_v62  ;;  %v4243_v42 = vsub.f32 %v7633_v55, %v4201_v59 }
 0x590   :  { %v4261_v3 = vmul.f32 1.442695, %v4243_v42 }
 0x591   :  { %v4204_v32 = vpop.xlane.xlu0 %4203  ;;  %v4207_v34 = vpop.xlane.xlu1 %4206 }
 0x592   :  { %6652 = vpow2.f32 %v4261_v3  ;;  %v4244_v9 = vsub.f32 %v7609_v38, %v4204_v32  ;;  %v4245_v24 = vsub.f32 %v7637_v51, %v4207_v34 }
 0x594   :  { %v4263_v29 = vmul.f32 1.442695, %v4244_v9  ;;  %v4265_v40 = vmul.f32 1.442695, %v4245_v24 }
 0x595   :  { %v4210_v1 = vpop.xlane.xlu0 %4209  ;;  %v4213_v5 = vpop.xlane.xlu1 %4212 }
 0x596   :  { %6654 = vpow2.f32 %v4263_v29  ;;  %v4246_v6 = vsub.f32 %v7611_v2, %v4210_v1  ;;  %v4247_v12 = vsub.f32 %v7645_v53, %v4213_v5 }
 0x597   :  { %6656 = vpow2.f32 %v4265_v40 }
 0x598   :  { %v7712_v43 = vpop.eup %6650  ;;  %v4267_v55 = vmul.f32 1.442695, %v4246_v6  ;;  %v4269_v21 = vmul.f32 1.442695, %v4247_v12 }
 0x599   :  { %v4216_v22 = vpop.xlane.xlu0 %4215  ;;  %v4219_v52 = vpop.xlane.xlu1 %4218  ;;  %v4289_v38 = vsel %vm1534_vm3, %v7712_v43, 0.0 }
 0x59a   :  { %6658 = vpow2.f32 %v4267_v55  ;;  %v4248_v51 = vsub.f32 %v7613_v20, %v4216_v22  ;;  %v4249_v13 = vsub.f32 %v7651_v27, %v4219_v52  ;;  %4290 = vadd.xlane.f32.xlu1 %v4289_v38 }
 0x59b   :  { %6660 = vpow2.f32 %v4269_v21 }
 0x59c   :  { %v7718_v2 = vpop.eup %6652  ;;  %v4271_v53 = vmul.f32 1.442695, %v4248_v51  ;;  %v4273_v11 = vmul.f32 1.442695, %v4249_v13 }
 0x59d   :  { %v4222_v46 = vpop.xlane.xlu0 %4221  ;;  %v4225_v62 = vpop.xlane.xlu1 %4224  ;;  %v4295_v59 = vsel %vm1534_vm3, %v7718_v2, 0.0 }
 0x59e   :  { %6662 = vpow2.f32 %v4271_v53  ;;  %v4250_v42 = vsub.f32 %v7621_v57, %v4222_v46  ;;  %v4251_v3 = vsub.f32 %v7657_v37, %v4225_v62  ;;  %4296 = vadd.xlane.f32.xlu1 %v4295_v59 }
 0x59f   :  { %6664 = vpow2.f32 %v4273_v11 }
 0x5a0   :  { %v7724_v20 = vpop.eup %6654  ;;  %v4275_v27 = vmul.f32 1.442695, %v4250_v42  ;;  %v4277_v32 = vmul.f32 1.442695, %v4251_v3 }
 0x5a1   :  { %v7726_v34 = vpop.eup %6656  ;;  %v4228_v9 = vpop.xlane.xlu0 %4227  ;;  %v4298_v29 = vsel %vm1534_vm3, %v7724_v20, 0.0 }
 0x5a2   :  { %v4231_v24 = vpop.xlane.xlu1 %4230  ;;  %6666 = vpow2.f32 %v4275_v27  ;;  %v4252_v40 = vsub.f32 %v7623_v23, %v4228_v9  ;;  %4299 = vadd.xlane.f32.xlu0 %v4298_v29  ;;  %v4301_v37 = vsel %vm1534_vm3, %v7726_v34, 0.0 }
 0x5a3   :  { %v4253_v57 = vsub.f32 %v7663_v30, %v4231_v24  ;;  %6668 = vpow2.f32 %v4277_v32  ;;  %4302 = vadd.xlane.f32.xlu1 %v4301_v37 }
 0x5a4   :  { %v7734_v1 = vpop.eup %6658  ;;  %v4279_v5 = vmul.f32 1.442695, %v4252_v40 }
 0x5a5   :  { %v4281_v6 = vmul.f32 1.442695, %v4253_v57  ;;  %v7736_v12 = vpop.eup %6660  ;;  %v4234_v55 = vpop.xlane.xlu0 %4233  ;;  %v4304_v22 = vsel %vm1534_vm3, %v7734_v1, 0.0 }
 0x5a6   :  { %v4237_v21 = vpop.xlane.xlu1 %4236  ;;  %6670 = vpow2.f32 %v4279_v5  ;;  %v4254_v23 = vsub.f32 %v7631_v17, %v4234_v55  ;;  %4305 = vadd.xlane.f32.xlu0 %v4304_v22  ;;  %v4307_v52 = vsel %vm1534_vm3, %v7736_v12, 0.0 }
 0x5a7   :  { %v4255_v30 = vsub.f32 %v7669_v31, %v4237_v21  ;;  %6672 = vpow2.f32 %v4281_v6  ;;  %4308 = vadd.xlane.f32.xlu1 %v4307_v52 }
 0x5a8   :  { %v7744_v38 = vpop.eup %6662  ;;  %v4283_v51 = vmul.f32 1.442695, %v4254_v23 }
 0x5a9   :  { %v4285_v13 = vmul.f32 1.442695, %v4255_v30  ;;  %v7746_v53 = vpop.eup %6664  ;;  %v4240_v11 = vpop.xlane.xlu0 %4239  ;;  %v4310_v46 = vsel %vm1534_vm3, %v7744_v38, 0.0 }
 0x5aa   :  { %6674 = vpow2.f32 %v4283_v51  ;;  %v4256_v17 = vsub.f32 %v7643_v48, %v4240_v11  ;;  %4311 = vadd.xlane.f32.xlu0 %v4310_v46  ;;  %v4313_v31 = vsel %vm1534_vm3, %v7746_v53, 0.0 }
 0x5ab   :  { %6676 = vpow2.f32 %v4285_v13  ;;  %4314 = vadd.xlane.f32.xlu1 %v4313_v31 }
 0x5ac   :  { %v7753_v62 = vpop.eup %6666  ;;  %v4287_v59 = vmul.f32 1.442695, %v4256_v17 }
 0x5ad   :  { %v7755_v42 = vpop.eup %6668  ;;  %v4316_v3 = vsel %vm1534_vm3, %v7753_v62, 0.0  ;;  %v7785_v55 = vpop.permute.xlu0 %5139 }
 0x5ae   :  { %6678 = vpow2.f32 %v4287_v59  ;;  %4317 = vadd.xlane.f32.xlu0 %v4316_v3  ;;  %v4319_v27 = vsel %vm1534_vm3, %v7755_v42, 0.0 }
 0x5af   :  { %4320 = vadd.xlane.f32.xlu1 %v4319_v27 }
 0x5b0   :  { %v7761_v48 = vpop.eup %6670 }
 0x5b1   :  { %v7763_v32 = vpop.eup %6672  ;;  %v4322_v9 = vsel %vm1534_vm3, %v7761_v48, 0.0  ;;  %v7787_v21 = vpop.permute.xlu0 %5293 }
 0x5b2   :  { %4323 = vadd.xlane.f32.xlu0 %v4322_v9  ;;  %v4325_v24 = vsel %vm1534_vm3, %v7763_v32, 0.0 }
 0x5b3   :  { %4326 = vadd.xlane.f32.xlu1 %v4325_v24 }
 0x5b4   :  { %v7769_v29 = vpop.eup %6674 }
 0x5b5   :  { %v7771_v40 = vpop.eup %6676  ;;  %v4328_v57 = vsel %vm1534_vm3, %v7769_v29, 0.0 }
 0x5b6   :  { %4329 = vadd.xlane.f32.xlu0 %v4328_v57  ;;  %v4331_v37 = vsel %vm1534_vm3, %v7771_v40, 0.0 }
 0x5b7   :  { %4332 = vadd.xlane.f32.xlu1 %v4331_v37 }
 0x5b8   :  { %v7777_v5 = vpop.eup %6678 }
 0x5b9   :  { %v4334_v6 = vsel %vm1534_vm3, %v7777_v5, 0.0 }
 0x5ba   :  { %4335 = vadd.xlane.f32.xlu0 %v4334_v6 }
 0x5c8   :  { %5524 = vrot.lane.b32.xlu1 %v6995_v15, %s6743_s11 }
 0x5d0   :  { %5447 = vrot.lane.b32.xlu0 %v6989_v14, %s6743_s11  ;;  %v7796_v14 = vpop.permute.xlu1 %5216 }
 0x5d4   :  { %v7798_v15 = vpop.permute.xlu1 %5370 }
 0x5e2   :  { %v4294_v22 = vpop.xlane.xlu0 %4293 }
 0x5e3   :  { %6680 = vrcp.f32 %v4294_v22 }
 0x5ed   :  { %v6681_v23 = vpop.eup %6680 }
 0x5ee   :  { %v4354_v30 = vmul.f32 %v6681_v23, %v7696_v10 }
 0x5f0   :  { %6460 = vmatmul.mubr.msk.f32.vlgmr.msra.gmra.mrb[44].mxu0 %vm1713_vm4, %v4354_v30 }
 0x5f1   :  { %6468 = vmatpush3.msk.msra.mxu0 %vm1717_vm2, %v7700_v35  ;;  %6469 = vmatprep.mubr.msk.f32.mxu0 %vm6738_vm0, %v6736_v28 }
 0x5f2   :  { %6477 = vmatprep.subr.mxu0 %v6736_v28 }
 0x627   :  { %v4291_v52 = vpop.xlane.xlu1 %4290 }
 0x628   :  { %6682 = vrcp.f32 %v4291_v52 }
 0x62b   :  { %v4297_v51 = vpop.xlane.xlu1 %4296 }
 0x62c   :  { %6684 = vrcp.f32 %v4297_v51 }
 0x62f   :  { %v4300_v13 = vpop.xlane.xlu0 %4299 }
 0x630   :  { %6686 = vrcp.f32 %v4300_v13  ;;  %v4303_v10 = vpop.xlane.xlu1 %4302 }
 0x631   :  { %6688 = vrcp.f32 %v4303_v10 }
 0x632   :  { %v6683_v11 = vpop.eup %6682 }
 0x633   :  { %v4353_v35 = vmul.f32 %v6683_v11, %v7712_v43  ;;  %v4306_v46 = vpop.xlane.xlu0 %4305 }
 0x634   :  { %6690 = vrcp.f32 %v4306_v46  ;;  %v4309_v17 = vpop.xlane.xlu1 %4308 }
 0x635   :  { %6692 = vrcp.f32 %v4309_v17  ;;  %6455 = vmatmul.mubr.msk.f32.vlgmr.msra.gmra.mrb[56].mxu1 %vm1713_vm4, %v4353_v35 }
 0x636   :  { %v6685_v31 = vpop.eup %6684  ;;  %6463 = vmatpush3.msk.msra.mxu1 %vm1717_vm2, %v7677_v19  ;;  %6464 = vmatprep.mubr.msk.f32.mxu1 %vm6738_vm0, %v6736_v28 }
 0x637   :  { %v4355_v59 = vmul.f32 %v6685_v31, %v7718_v2  ;;  %v4312_v3 = vpop.xlane.xlu0 %4311  ;;  %6472 = vmatprep.subr.mxu1 %v6736_v28 }
 0x638   :  { %6694 = vrcp.f32 %v4312_v3  ;;  %v4315_v43 = vpop.xlane.xlu1 %4314  ;;  %v5681_v3 = vld [vmem:[%s7972_s3] sm:$0xff] }
 0x639   :  { %6696 = vrcp.f32 %v4315_v43  ;;  %6465 = vmatmul.mubr.msk.f32.vlgmr.msra.gmra.mrb[58].mxu1 %vm1713_vm4, %v4355_v59 }
 0x63a   :  { %v6687_v27 = vpop.eup %6686  ;;  %6473 = vmatpush3.msk.msra.mxu1 %vm1717_vm2, %v7679_v39  ;;  %6474 = vmatprep.mubr.msk.f32.mxu1 %vm6738_vm0, %v6736_v28 }
 0x63b   :  { %v6689_v19 = vpop.eup %6688  ;;  %v4356_v9 = vmul.f32 %v6687_v27, %v7724_v20  ;;  %v4318_v24 = vpop.xlane.xlu0 %4317  ;;  %6482 = vmatprep.subr.mxu1 %v6736_v28 }
 0x63c   :  { %v4357_v2 = vmul.f32 %v6689_v19, %v7726_v34  ;;  %6698 = vrcp.f32 %v4318_v24  ;;  %v4321_v57 = vpop.xlane.xlu1 %4320 }
 0x63d   :  { %6700 = vrcp.f32 %v4321_v57  ;;  %6470 = vmatmul.mubr.msk.f32.vlgmr.msra.gmra.mrb[46].mxu0 %vm1713_vm4, %v4356_v9 }
 0x63e   :  { %v6691_v37 = vpop.eup %6690  ;;  %6475 = vmatmul.mubr.msk.f32.vlgmr.msra.gmra.mrb[60].mxu1 %vm1713_vm4, %v4357_v2  ;;  %6478 = vmatpush3.msk.msra.mxu0 %vm1717_vm2, %v7683_v25 }
 0x63f   :  { %v6693_v39 = vpop.eup %6692  ;;  %v4358_v6 = vmul.f32 %v6691_v37, %v7734_v1  ;;  %6483 = vmatpush3.msk.msra.mxu1 %vm1717_vm2, %v7702_v54  ;;  %v4324_v20 = vpop.xlane.xlu0 %4323  ;;  %6479 = vmatprep.mubr.msk.f32.mxu0 %vm6738_vm0, %v6736_v28 }
 0x640   :  { %v4359_v34 = vmul.f32 %v6693_v39, %v7736_v12  ;;  %6702 = vrcp.f32 %v4324_v20  ;;  %v4327_v22 = vpop.xlane.xlu1 %4326  ;;  %6484 = vmatprep.mubr.msk.f32.mxu1 %vm6738_vm0, %v6736_v28  ;;  %6487 = vmatprep.subr.mxu0 %v6736_v28 }
 0x641   :  { %6704 = vrcp.f32 %v4327_v22  ;;  %6492 = vmatprep.subr.mxu1 %v6736_v28  ;;  %6480 = vmatmul.mubr.msk.f32.vlgmr.msra.gmra.mrb[48].mxu0 %vm1713_vm4, %v4358_v6 }
 0x642   :  { %v6695_v25 = vpop.eup %6694  ;;  %6485 = vmatmul.mubr.msk.f32.vlgmr.msra.gmra.mrb[62].mxu1 %vm1713_vm4, %v4359_v34  ;;  %6488 = vmatpush3.msk.msra.mxu0 %vm1717_vm2, %v7687_v16 }
 0x643   :  { %v6697_v54 = vpop.eup %6696  ;;  %v4360_v1 = vmul.f32 %v6695_v25, %v7744_v38  ;;  %6493 = vmatpush3.msk.msra.mxu1 %vm1717_vm2, %v7704_v7  ;;  %v4330_v12 = vpop.xlane.xlu0 %4329  ;;  %6489 = vmatprep.mubr.msk.f32.mxu0 %vm6738_vm0, %v6736_v28 }
 0x644   :  { %v4361_v23 = vmul.f32 %v6697_v54, %v7746_v53  ;;  %6706 = vrcp.f32 %v4330_v12  ;;  %v4333_v30 = vpop.xlane.xlu1 %4332  ;;  %6494 = vmatprep.mubr.msk.f32.mxu1 %vm6738_vm0, %v6736_v28  ;;  %6497 = vmatprep.subr.mxu0 %v6736_v28 }
 0x645   :  { %6708 = vrcp.f32 %v4333_v30  ;;  %6502 = vmatprep.subr.mxu1 %v6736_v28  ;;  %6490 = vmatmul.mubr.msk.f32.vlgmr.msra.gmra.mrb[50].mxu0 %vm1713_vm4, %v4360_v1 }
 0x646   :  { %v6699_v16 = vpop.eup %6698  ;;  %6495 = vmatmul.mubr.msk.f32.vlgmr.msra.gmra.mrb[64].mxu1 %vm1713_vm4, %v4361_v23  ;;  %6498 = vmatpush3.msk.msra.mxu0 %vm1717_vm2, %v7693_v60 }
 0x647   :  { %v6701_v7 = vpop.eup %6700  ;;  %v4362_v38 = vmul.f32 %v6699_v16, %v7753_v62  ;;  %6503 = vmatpush3.msk.msra.mxu1 %vm1717_vm2, %v7785_v55  ;;  %v4336_v53 = vpop.xlane.xlu0 %4335  ;;  %6499 = vmatprep.mubr.msk.f32.mxu0 %vm6738_vm0, %v6736_v28 }
 0x648   :  { %v4363_v52 = vmul.f32 %v6701_v7, %v7755_v42  ;;  %6710 = vrcp.f32 %v4336_v53  ;;  %6504 = vmatprep.mubr.msk.f32.mxu1 %vm6738_vm0, %v6736_v28  ;;  %6507 = vmatprep.subr.mxu0 %v6736_v28  ;;  %v5525_v13 = vpop.permute.xlu1 %5524 }
 0x649   :  { %6512 = vmatprep.subr.mxu1 %v6736_v28  ;;  %6500 = vmatmul.mubr.msk.f32.vlgmr.msra.gmra.mrb[52].mxu0 %vm1713_vm4, %v4362_v38 }
 0x64a   :  { %v6703_v60 = vpop.eup %6702  ;;  %6505 = vmatmul.mubr.msk.f32.vlgmr.msra.gmra.mrb[66].mxu1 %vm1713_vm4, %v4363_v52  ;;  %6508 = vmatpush3.msk.msra.mxu0 %vm1717_vm2, %v7796_v14 }
 0x64b   :  { %v6705_v62 = vpop.eup %6704  ;;  %v4364_v55 = vmul.f32 %v6703_v60, %v7761_v48  ;;  %6513 = vmatpush3.msk.msra.mxu1 %vm1717_vm2, %v7787_v21  ;;  %6509 = vmatprep.mubr.msk.f32.mxu0 %vm6738_vm0, %v6736_v28  ;;  %v5448_v51 = vpop.permute.xlu0 %5447 }
 0x64c   :  { %v4365_v42 = vmul.f32 %v6705_v62, %v7763_v32  ;;  %6514 = vmatprep.mubr.msk.f32.mxu1 %vm6738_vm0, %v6736_v28  ;;  %6517 = vmatprep.subr.mxu0 %v6736_v28 }
 0x64d   :  { %6522 = vmatprep.subr.mxu1 %v6736_v28  ;;  %6510 = vmatmul.mubr.msk.f32.vlgmr.msra.gmra.mrb[54].mxu0 %vm1713_vm4, %v4364_v55 }
 0x64e   :  { %v6707_v14 = vpop.eup %6706  ;;  %6515 = vmatmul.mubr.msk.f32.vlgmr.msra.gmra.mrb[68].mxu1 %vm1713_vm4, %v4365_v42  ;;  %6518 = vmatpush3.msk.msra.mxu0 %vm1717_vm2, %v7798_v15 }
 0x64f   :  { %v6709_v48 = vpop.eup %6708  ;;  %v4366_v21 = vmul.f32 %v6707_v14, %v7769_v29  ;;  %6523 = vmatpush3.msk.msra.mxu1 %vm1717_vm2, %v5448_v51  ;;  %6519 = vmatprep.mubr.msk.f32.mxu0 %vm6738_vm0, %v6736_v28 }
 0x650   :  { %v4367_v32 = vmul.f32 %v6709_v48, %v7771_v40  ;;  %6524 = vmatprep.mubr.msk.f32.mxu1 %vm6738_vm0, %v6736_v28  ;;  %6527 = vmatprep.subr.mxu0 %v6736_v28 }
 0x651   :  { %6520 = vmatmul.mubr.msk.f32.vlgmr.msra.gmra.mrb[56].mxu0 %vm1713_vm4, %v4366_v21  ;;  %6532 = vmatprep.subr.mxu1 %v5681_v3 }
 0x652   :  { %v6711_v10 = vpop.eup %6710  ;;  %6525 = vmatmul.mubr.msk.f32.vlgmr.msra.gmra.mrb[70].mxu1 %vm1713_vm4, %v4367_v32  ;;  %6528 = vmatpush3.msk.msra.mxu0 %vm1717_vm2, %v5525_v13 }
 0x653   :  { %v4368_v29 = vmul.f32 %v6711_v10, %v7777_v5  ;;  %6529 = vmatprep.mubr.msk.f32.mxu0 %vm6738_vm0, %v6736_v28  ;;  %6533 = vmatpush3.msra.mxu1 %v5681_v3 }
 0x655   :  { %6530 = vmatmul.mubr.msk.f32.vlgmr.msra.gmra.mrb[58].mxu0 %vm1713_vm4, %v4368_v29 }
 0x6c3   :  { %v4519_v40 = vpop.f32.mrb[44].mxu0 }
 0x6c4   :  { %v6461_v15 = vpop.f32.mrb[45].mxu0  ;;  %5619 = vrot.lane.b32.xlu1 %v4519_v40, %s6744_s12 }
 0x708   :  { %v4442_v11 = vpop.f32.mrb[56].mxu1 }
 0x709   :  { %5617 = vrot.lane.b32.xlu0 %v4442_v11, %s6744_s12  ;;  %v6456_v35 = vpop.f32.mrb[57].mxu1 }
 0x70c   :  { %v4596_v46 = vpop.f32.mrb[58].mxu1 }
 0x70d   :  { %5621 = vrot.lane.b32.xlu0 %v4596_v46, %s6744_s12  ;;  %v6466_v17 = vpop.f32.mrb[59].mxu1 }
 0x710   :  { %v4673_v31 = vpop.f32.mrb[46].mxu0 }
 0x711   :  { %v4750_v5 = vpop.f32.mrb[60].mxu1  ;;  %v6471_v59 = vpop.f32.mrb[47].mxu0  ;;  %5623 = vrot.lane.b32.xlu1 %v4673_v31, %s6744_s12 }
 0x712   :  { %5625 = vrot.lane.b32.xlu0 %v4750_v5, %s6744_s12  ;;  %v6476_v28 = vpop.f32.mrb[61].mxu1 }
 0x714   :  { %v4827_v43 = vpop.f32.mrb[48].mxu0 }
 0x715   :  { %v4904_v27 = vpop.f32.mrb[62].mxu1  ;;  %v6481_v19 = vpop.f32.mrb[49].mxu0  ;;  %5627 = vrot.lane.b32.xlu1 %v4827_v43, %s6744_s12 }
 0x716   :  { %5629 = vrot.lane.b32.xlu0 %v4904_v27, %s6744_s12  ;;  %v6486_v9 = vpop.f32.mrb[63].mxu1 }
 0x718   :  { %v4981_v24 = vpop.f32.mrb[50].mxu0 }
 0x719   :  { %v5058_v2 = vpop.f32.mrb[64].mxu1  ;;  %v6491_v57 = vpop.f32.mrb[51].mxu0  ;;  %5631 = vrot.lane.b32.xlu1 %v4981_v24, %s6744_s12 }
 0x71a   :  { %5633 = vrot.lane.b32.xlu0 %v5058_v2, %s6744_s12  ;;  %v6496_v37 = vpop.f32.mrb[65].mxu1 }
 0x71c   :  { %v5135_v39 = vpop.f32.mrb[52].mxu0 }
 0x71d   :  { %v5212_v6 = vpop.f32.mrb[66].mxu1  ;;  %v6501_v20 = vpop.f32.mrb[53].mxu0  ;;  %5635 = vrot.lane.b32.xlu1 %v5135_v39, %s6744_s12 }
 0x71e   :  { %5637 = vrot.lane.b32.xlu0 %v5212_v6, %s6744_s12  ;;  %v6506_v34 = vpop.f32.mrb[67].mxu1 }
 0x720   :  { %v5289_v22 = vpop.f32.mrb[54].mxu0 }
 0x721   :  { %v5366_v25 = vpop.f32.mrb[68].mxu1  ;;  %5639 = vrot.lane.b32.xlu1 %v5289_v22, %s6744_s12  ;;  %v6511_v54 = vpop.f32.mrb[55].mxu0 }
 0x722   :  { %5641 = vrot.lane.b32.xlu0 %v5366_v25, %s6744_s12  ;;  %v6516_v1 = vpop.f32.mrb[69].mxu1 }
 0x724   :  { %v5443_v12 = vpop.f32.mrb[56].mxu0 }
 0x725   :  { %v5520_v23 = vpop.f32.mrb[70].mxu1  ;;  %5643 = vrot.lane.b32.xlu1 %v5443_v12, %s6744_s12  ;;  %v6521_v30 = vpop.f32.mrb[57].mxu0 }
 0x726   :  { %5645 = vrot.lane.b32.xlu0 %v5520_v23, %s6744_s12  ;;  %v6526_v16 = vpop.f32.mrb[71].mxu1 }
 0x728   :  { %v5597_v7 = vpop.f32.mrb[58].mxu0 }
 0x729   :  { %5647 = vrot.lane.b32.xlu1 %v5597_v7, %s6744_s12  ;;  %v6531_v38 = vpop.f32.mrb[59].mxu0 }
 0x736   :  { %v5620_v53 = vpop.permute.xlu1 %5619 }
 0x737   :  { %v5666_v60 = vsel %vm214_vm1, %v7583_v44, %v5620_v53 }
 0x77b   :  { %v5618_v52 = vpop.permute.xlu0 %5617 }
 0x77c   :  { %v5665_v62 = vsel %vm214_vm1, %v7581_v41, %v5618_v52 }
 0x77d   :  { %v5705_v55 = vcombine.low %v5665_v62, %v5666_v60 }
 0x77f   :  { %v5622_v42 = vpop.permute.xlu0 %5621  ;;  %v5713_v13 = vrot.slane %v5705_v55, %v6847_v36 }
 0x780   :  { %v5667_v14 = vsel %vm214_vm1, %v7585_v45, %v5622_v42 }
 0x783   :  { %v5624_v51 = vpop.permute.xlu1 %5623 }
 0x784   :  { %v5626_v48 = vpop.permute.xlu0 %5625  ;;  %v5668_v21 = vsel %vm214_vm1, %v7589_v61, %v5624_v51 }
 0x785   :  { %v5706_v32 = vcombine.low %v5667_v14, %v5668_v21  ;;  %v5669_v44 = vsel %vm214_vm1, %v7587_v18, %v5626_v48 }
 0x787   :  { %v5720_v10 = vrot.slane %v5706_v32, %v6847_v36  ;;  %v5628_v29 = vpop.permute.xlu1 %5627 }
 0x788   :  { %v5630_v41 = vpop.permute.xlu0 %5629  ;;  %v5670_v40 = vsel %vm214_vm1, %v7593_v33, %v5628_v29 }
 0x789   :  { %v5721_v15 = vcombine.low %v5713_v13, %v5720_v10  ;;  %v5722_v45 = vcombine.low %v5669_v44, %v5670_v40  ;;  %v5671_v61 = vsel %vm214_vm1, %v7591_v49, %v5630_v41 }
 0x78b   :  { %6534 = vmatprep.mubr.msk.f32.mxu1 %vm5773_vm5, %v5721_v15  ;;  %v5632_v11 = vpop.permute.xlu1 %5631  ;;  %v5730_v18 = vrot.slane %v5722_v45, %v6847_v36 }
 0x78c   :  { %v5634_v35 = vpop.permute.xlu0 %5633  ;;  %v5672_v46 = vsel %vm214_vm1, %v7595_v8, %v5632_v11 }
 0x78d   :  { %v5723_v17 = vcombine.low %v5671_v61, %v5672_v46  ;;  %v5673_v33 = vsel %vm214_vm1, %v7615_v58, %v5634_v35 }
 0x78f   :  { %v5737_v31 = vrot.slane %v5723_v17, %v6847_v36  ;;  %v5636_v5 = vpop.permute.xlu1 %5635 }
 0x790   :  { %v5638_v59 = vpop.permute.xlu0 %5637  ;;  %v5674_v28 = vsel %vm214_vm1, %v7597_v50, %v5636_v5 }
 0x791   :  { %v5738_v3 = vcombine.low %v5730_v18, %v5737_v31  ;;  %v5739_v43 = vcombine.low %v5673_v33, %v5674_v28  ;;  %v5675_v8 = vsel %vm214_vm1, %v7617_v0, %v5638_v59 }
 0x793   :  { %6535 = vmatmul.mubr.msk.f32.vlgmr.msra.gmra.mrb[72].mxu1 %vm5773_vm5, %v5738_v3  ;;  %v5640_v49 = vpop.permute.xlu1 %5639  ;;  %v5747_v24 = vrot.slane %v5739_v43, %v6847_v36 }
 0x794   :  { %v5642_v27 = vpop.permute.xlu0 %5641  ;;  %v5676_v19 = vsel %vm214_vm1, %v7599_v56, %v5640_v49 }
 0x795   :  { %v5740_v9 = vcombine.low %v5675_v8, %v5676_v19  ;;  %v5677_v50 = vsel %vm214_vm1, %v7619_v47, %v5642_v27 }
 0x797   :  { %v5754_v58 = vrot.slane %v5740_v9, %v6847_v36  ;;  %v5644_v2 = vpop.permute.xlu1 %5643 }
 0x798   :  { %v5678_v57 = vsel %vm214_vm1, %v7601_v63, %v5644_v2  ;;  %v5646_v39 = vpop.permute.xlu0 %5645  ;;  %v6016_v63 = vld [vmem:[%s7973_s4] ss:$0 sm:$0xff] }
 0x799   :  { %v5755_v37 = vcombine.low %v5747_v24, %v5754_v58  ;;  %v5756_v6 = vcombine.low %v5677_v50, %v5678_v57  ;;  %v5679_v56 = vsel %vm214_vm1, %v7625_v26, %v5646_v39 }
 0x79b   :  { %6537 = vmatprep.mubr.msk.f32.mxu1 %vm5773_vm5, %v5755_v37  ;;  %v5648_v0 = vpop.permute.xlu1 %5647  ;;  %v5764_v22 = vrot.slane %v5756_v6, %v6847_v36 }
 0x79c   :  { %v5680_v20 = vsel %vm214_vm1, %v7603_v4, %v5648_v0 }
 0x79d   :  { %v5757_v34 = vcombine.low %v5679_v56, %v5680_v20 }
 0x79f   :  { %v5771_v47 = vrot.slane %v5757_v34, %v6847_v36 }
 0x7a1   :  { %v5772_v25 = vcombine.low %v5764_v22, %v5771_v47 }
 0x7a3   :  { %6538 = vmatmul.mubr.msk.f32.gmra.mrb[74].mxu1 %vm5773_vm5, %v5772_v25 }
 0x866   :  { %v6536_v54 = vpop.f32.mrb[72].mxu1 }
 0x867   :  { %v5854_v1 = vadd.f32 %v6536_v54, %v6016_v63  ;;  %v5848_v12 = vpop.f32.mrb[73].mxu1 }
 0x868   :  { %v5849_v23 = vadd.f32 %v6016_v63, %v5848_v12 }
 0x869   :  { %5868 = vst [vmem:[#allocation2 + $0x8] sm:$0xff] %v5854_v1 }
 0x86a   :  { %5867 = vst [vmem:[#allocation2] sm:$0xff] %v5849_v23 }
 0x876   :  { %v6539_v4 = vpop.f32.mrb[74].mxu1 }
 0x877   :  { %v5864_v26 = vadd.f32 %v6539_v4, %v6016_v63  ;;  %v5858_v30 = vpop.f32.mrb[75].mxu1 }
 0x878   :  { %v5859_v16 = vadd.f32 %v6016_v63, %v5858_v30 }
 0x879   :  { %5870 = vst [vmem:[#allocation2 + $0x18] sm:$0xff] %v5864_v26 }
 0x87a   :  { %5869 = vst [vmem:[#allocation2 + $0x10] sm:$0xff] %v5859_v16 }
 0x87b   :  { %6723 = shalt.err (!%p6720_p4)
}
 0x87c   :  { %s6724_s20 = scalar_lea.hbm %s7974_s5, 512 }
 0x87d   :  { %p6725_p5 = scmp.ne.s32.totalorder %s7974_s5, %s6724_s20  ;;  %p6728_p6 = scmp.lt.u32.totalorder %s6724_s20, %s7974_s5 }
 0x87f   :  { %p6730_p7 = pnand %p6728_p6, %p6725_p5 }
 0x881   :  { %6733 = shalt.err (!%p6730_p7)
}
 0x882   :  { %s6746_s25 = smov 128   ;;  %s6747_s26 = smov 8  }
 0x883   :  { %5882 = dma.vmem_to_hbm [thread:$0]  %s5877_s17, 512, %s7974_s5, [#allocation3], %s6746_s25, %s6746_s25, %s6747_s26  }
 0x884   :  { %6734 = dma.done.wait [#allocation3], 512  }
 0x885   :  { %6735 = vsyncadd [#allocation3], 4294966784 }
 0x886   :  { %5886 = vsyncpa [#allocation3], 1 }

</bundles_post_ra>
